<compile_context>
chip_gen: v7x
topology: tpu7x:2x2x1
jax: 0.10.0
libtpu: 0.0.40
codegen_flags: <defaults>
</compile_context>

<pallas_src>
import functools

import jax
import jax.numpy as jnp
from jax import lax
from jax.experimental import pallas as pl
from jax.experimental.pallas import tpu as pltpu

NEG_SLOPE = 0.01  # nn.LeakyReLU() default negative_slope
BN_EPS = 1e-5
LANE = 128


def _leaky(x):
    return jnp.where(x > 0, x, NEG_SLOPE * x)


def _round_up(x, m):
    return (x + m - 1) // m * m


def double_conv_kernel(x_ref, w1_ref, b1_ref, w2_ref, b2_ref, o_ref, *, H, W):
    # x_ref:  (1, H*W, Cin_p)   f32
    # w1_ref: (Cin_p, Cout_p)   f32      b1_ref/b2_ref: (1, Cout_p) f32
    # w2_ref: (9*Cout_p, Cout_p) bf16    o_ref: (1, H*W, Cout_p) f32
    Cp = o_ref.shape[-1]

    # ---- conv1 (1x1) + folded BN1 + LeakyReLU ----
    x = x_ref[0]                                                    # (H*W, Cin_p)
    y1 = jnp.dot(x, w1_ref[...], preferred_element_type=jnp.float32) + b1_ref[...]
    y1 = _leaky(y1).astype(jnp.bfloat16)                            # (H*W, Cp) bf16

    # ---- padding=1 built as a value (no scratch round trip, no zero-fill) ----
    # All of the pad / slice / concat layout work happens on bf16 (half the bytes).
    y1 = y1.reshape(H, W, Cp)
    zrow = jnp.zeros((1, W, Cp), jnp.bfloat16)
    zcol = jnp.zeros((H + 2, 1, Cp), jnp.bfloat16)
    pad = jnp.concatenate([zrow, y1, zrow], axis=0)                 # (H+2, W,   Cp)
    pad = jnp.concatenate([zcol, pad, zcol], axis=1)                # (H+2, W+2, Cp)

    # ---- conv2 (3x3, padding=1) as a single im2col matmul in bf16 ----
    taps = [pad[ky:ky + H, kx:kx + W, :].reshape(H * W, Cp)
            for ky in range(3) for kx in range(3)]
    patches = jnp.concatenate(taps, axis=-1)                        # (H*W, 9*Cp) bf16
    acc = jnp.dot(patches, w2_ref[...], preferred_element_type=jnp.float32)

    # ---- folded BN2 + LeakyReLU, lane-dense store ----
    o_ref[0] = _leaky(acc + b2_ref[...])


def double_conv_pallas(x_nchw, folded, out_channels):
    """x_nchw: (N, Cin, H, W) float32. Returns (N, out_channels, H, W)."""
    w1, b1, w2, b2 = folded                  # (Cin_p,Cout_p), (1,Cout_p), (9*Cout_p,Cout_p) bf16, (1,Cout_p)
    N, Cin, H, W = x_nchw.shape
    cin_p, cout_p = w1.shape

    # NHWC, pad channels to lane width, flatten spatial dims (wrapper-side plumbing).
    x = jnp.transpose(x_nchw, (0, 2, 3, 1)).astype(jnp.float32)
    x = jnp.pad(x, ((0, 0), (0, 0), (0, 0), (0, cin_p - Cin)))
    x = x.reshape(N, H * W, cin_p)

    kernel = functools.partial(double_conv_kernel, H=H, W=W)

    out = pl.pallas_call(
        kernel,
        out_shape=jax.ShapeDtypeStruct((N, H * W, cout_p), jnp.float32),
        grid_spec=pltpu.PrefetchScalarGridSpec(
            num_scalar_prefetch=0,
            grid=(N,),
            in_specs=[
                pl.BlockSpec((1, H * W, cin_p), lambda n: (n, 0, 0)),
                pl.BlockSpec((cin_p, cout_p), lambda n: (0, 0)),
                pl.BlockSpec((1, cout_p), lambda n: (0, 0)),
                pl.BlockSpec((9 * cout_p, cout_p), lambda n: (0, 0)),
                pl.BlockSpec((1, cout_p), lambda n: (0, 0)),
            ],
            out_specs=pl.BlockSpec((1, H * W, cout_p), lambda n: (n, 0, 0)),
        ),
        compiler_params=pltpu.CompilerParams(dimension_semantics=("parallel",)),
    )(x, w1, b1, w2, b2)

    out = out.reshape(N, H, W, cout_p)[..., :out_channels]
    return jnp.transpose(out, (0, 3, 1, 2))  # back to NCHW


# ---------------- parameter construction (deterministic) ----------------
def make_params(key, in_channels, out_channels):
    ks = jax.random.split(key, 10)
    p = dict(
        w1=0.1 * jax.random.normal(ks[0], (out_channels, in_channels, 1, 1), jnp.float32),
        b1=0.1 * jax.random.normal(ks[1], (out_channels,), jnp.float32),
        g1=1.0 + 0.1 * jax.random.normal(ks[2], (out_channels,), jnp.float32),
        bt1=0.1 * jax.random.normal(ks[3], (out_channels,), jnp.float32),
        m1=0.1 * jax.random.normal(ks[4], (out_channels,), jnp.float32),
        v1=0.5 + jax.random.uniform(ks[5], (out_channels,), jnp.float32),
        w2=0.1 * jax.random.normal(ks[6], (out_channels, out_channels, 3, 3), jnp.float32),
        b2=0.1 * jax.random.normal(ks[7], (out_channels,), jnp.float32),
        g2=1.0 + 0.1 * jax.random.normal(ks[8], (out_channels,), jnp.float32),
        bt2=0.1 * jax.random.normal(ks[9], (out_channels,), jnp.float32),
        m2=0.05 * jnp.ones((out_channels,), jnp.float32),
        v2=0.8 * jnp.ones((out_channels,), jnp.float32),
    )
    return p


def fold_params(p):
    """Fold BN (inference mode) into conv weights/biases, pad channels to lane
    width, and pre-arrange for the in-kernel channels-last matmuls."""
    Cout, Cin = p["w1"].shape[0], p["w1"].shape[1]
    cin_p = _round_up(Cin, LANE)
    cout_p = _round_up(Cout, LANE)

    s1 = p["g1"] / jnp.sqrt(p["v1"] + BN_EPS)                       # (Cout,)
    w1 = jnp.transpose(p["w1"][:, :, 0, 0], (1, 0)) * s1[None, :]   # (Cin, Cout)
    b1 = (p["b1"] - p["m1"]) * s1 + p["bt1"]                        # (Cout,)

    s2 = p["g2"] / jnp.sqrt(p["v2"] + BN_EPS)
    # torch w2: (Cout, Cin, ky, kx) -> (ky, kx, Cin, Cout), scale per output channel
    w2 = jnp.transpose(p["w2"], (2, 3, 1, 0)) * s2[None, None, None, :]
    b2 = (p["b2"] - p["m2"]) * s2 + p["bt2"]                        # (Cout,)

    # Zero-pad channels (padded channels produce exact zeros through both convs).
    w1p = jnp.zeros((cin_p, cout_p), jnp.float32).at[:Cin, :Cout].set(w1)
    b1p = jnp.zeros((1, cout_p), jnp.float32).at[0, :Cout].set(b1)
    w2p = jnp.zeros((3, 3, cout_p, cout_p), jnp.float32).at[:, :, :Cout, :Cout].set(w2)
    w2p = w2p.reshape(9 * cout_p, cout_p).astype(jnp.bfloat16)      # im2col weight, bf16
    b2p = jnp.zeros((1, cout_p), jnp.float32).at[0, :Cout].set(b2)
    return w1p, b1p, w2p, b2p


# ---------------- plain-JAX reference ----------------
def ref_double_conv(x, p):
    def bn(y, g, b, m, v):
        return (y - m[None, :, None, None]) / jnp.sqrt(v[None, :, None, None] + BN_EPS) \
               * g[None, :, None, None] + b[None, :, None, None]

    dn = ("NCHW", "OIHW", "NCHW")
    y = lax.conv_general_dilated(x, p["w1"], (1, 1), "VALID", dimension_numbers=dn)
    y = y + p["b1"][None, :, None, None]
    y = _leaky(bn(y, p["g1"], p["bt1"], p["m1"], p["v1"]))
    y = lax.conv_general_dilated(y, p["w2"], (1, 1), ((1, 1), (1, 1)), dimension_numbers=dn)
    y = y + p["b2"][None, :, None, None]
    y = _leaky(bn(y, p["g2"], p["bt2"], p["m2"], p["v2"]))
    return y


if __name__ == "__main__":
    key = jax.random.PRNGKey(0)
    kx, kp = jax.random.split(key)

    N, Cin, Cout, H, W = 2, 4, 8, 16, 16
    x = jax.random.normal(kx, (N, Cin, H, W), jnp.float32)

    params = make_params(kp, Cin, Cout)
    folded = fold_params(params)

    out = double_conv_pallas(x, folded, Cout)
    out = jax.block_until_ready(out)

    ref = ref_double_conv(x, params)
    max_err = float(jnp.max(jnp.abs(out - ref)))
    assert out.shape == (N, Cout, H, W), out.shape
    assert max_err < 2e-2, f"mismatch vs reference: {max_err}"

    print("KERNEL_OK")
</pallas_src>

<mosaic_0001>
module attributes {stable_mosaic.version = 11 : i64} {
  func.func @double_conv_kernel(%arg0: i32, %arg1: memref<1x256x128xf32, #tpu.memory_space<vmem>>, %arg2: memref<128x128xf32, #tpu.memory_space<vmem>>, %arg3: memref<1x128xf32, #tpu.memory_space<vmem>>, %arg4: memref<1152x128xbf16, #tpu.memory_space<vmem>>, %arg5: memref<1x128xf32, #tpu.memory_space<vmem>>, %arg6: memref<1x256x128xf32, #tpu.memory_space<vmem>>) attributes {dimension_semantics = [#tpu.dimension_semantics<parallel>], iteration_bounds = array<i64: 2>, scalar_prefetch = 0 : i64, scratch_operands = 0 : i64, tpu.core_type = #tpu.core_type<tc>, window_params = [{transform_indices = @transform_0, window_bounds = array<i64: 1, 256, 128>}, {pipeline_mode = #tpu.pipeline_mode<synchronous>, transform_indices = @transform_1, window_bounds = array<i64: 128, 128>}, {pipeline_mode = #tpu.pipeline_mode<synchronous>, transform_indices = @transform_2, window_bounds = array<i64: 1, 128>}, {pipeline_mode = #tpu.pipeline_mode<synchronous>, transform_indices = @transform_3, window_bounds = array<i64: 1152, 128>}, {pipeline_mode = #tpu.pipeline_mode<synchronous>, transform_indices = @transform_4, window_bounds = array<i64: 1, 128>}, {transform_indices = @transform_5, window_bounds = array<i64: 1, 256, 128>}]} {
    %c0 = arith.constant 0 : index
    %c0_0 = arith.constant 0 : index
    %c0_1 = arith.constant 0 : index
    %0 = vector.load %arg1[%c0, %c0_0, %c0_1] : memref<1x256x128xf32, #tpu.memory_space<vmem>>, vector<1x256x128xf32>
    %1 = vector.shape_cast %0 : vector<1x256x128xf32> to vector<256x128xf32>
    %c0_2 = arith.constant 0 : index
    %c0_3 = arith.constant 0 : index
    %2 = vector.load %arg2[%c0_2, %c0_3] : memref<128x128xf32, #tpu.memory_space<vmem>>, vector<128x128xf32>
    %cst = arith.constant dense<0.000000e+00> : vector<256x128xf32>
    %3 = tpu.matmul %1, %2, %cst {dimension_numbers = #tpu.dot_dimension_numbers<[1], [0], [0], [1], [0, 0, 1, 1], [], []>} : vector<256x128xf32>, vector<128x128xf32>, vector<256x128xf32> -> vector<256x128xf32>
    %c0_4 = arith.constant 0 : index
    %c0_5 = arith.constant 0 : index
    %4 = vector.load %arg3[%c0_4, %c0_5] : memref<1x128xf32, #tpu.memory_space<vmem>>, vector<1x128xf32>
    %5 = vector.broadcast %4 : vector<1x128xf32> to vector<256x128xf32>
    %6 = arith.addf %3, %5 : vector<256x128xf32>
    %cst_6 = arith.constant 0.000000e+00 : f32
    %7 = vector.broadcast %cst_6 : f32 to vector<256x128xf32>
    %8 = arith.cmpf ogt, %6, %7 : vector<256x128xf32>
    %cst_7 = arith.constant 0.00999999977 : f32
    %9 = vector.broadcast %cst_7 : f32 to vector<256x128xf32>
    %10 = arith.mulf %9, %6 : vector<256x128xf32>
    %11 = arith.select %8, %6, %10 : vector<256x128xi1>, vector<256x128xf32>
    %12 = arith.truncf %11 : vector<256x128xf32> to vector<256x128xbf16>
    %13 = vector.shape_cast %12 : vector<256x128xbf16> to vector<16x16x128xbf16>
    %cst_8 = arith.constant 0.000000e+00 : bf16
    %14 = vector.broadcast %cst_8 : bf16 to vector<1x16x128xbf16>
    %cst_9 = arith.constant 0.000000e+00 : bf16
    %15 = vector.broadcast %cst_9 : bf16 to vector<18x1x128xbf16>
    %16 = tpu.concatenate %14, %13, %14 in 0 : vector<1x16x128xbf16>, vector<16x16x128xbf16>, vector<1x16x128xbf16> -> vector<18x16x128xbf16>
    %17 = tpu.concatenate %15, %16, %15 in 1 : vector<18x1x128xbf16>, vector<18x16x128xbf16>, vector<18x1x128xbf16> -> vector<18x18x128xbf16>
    %18 = vector.extract_strided_slice %17 {offsets = [0, 0, 0], sizes = [16, 16, 128], strides = [1, 1, 1]} : vector<18x18x128xbf16> to vector<16x16x128xbf16>
    %19 = vector.shape_cast %18 : vector<16x16x128xbf16> to vector<256x128xbf16>
    %20 = vector.extract_strided_slice %17 {offsets = [0, 1, 0], sizes = [16, 16, 128], strides = [1, 1, 1]} : vector<18x18x128xbf16> to vector<16x16x128xbf16>
    %21 = vector.shape_cast %20 : vector<16x16x128xbf16> to vector<256x128xbf16>
    %22 = vector.extract_strided_slice %17 {offsets = [0, 2, 0], sizes = [16, 16, 128], strides = [1, 1, 1]} : vector<18x18x128xbf16> to vector<16x16x128xbf16>
    %23 = vector.shape_cast %22 : vector<16x16x128xbf16> to vector<256x128xbf16>
    %24 = vector.extract_strided_slice %17 {offsets = [1, 0, 0], sizes = [16, 16, 128], strides = [1, 1, 1]} : vector<18x18x128xbf16> to vector<16x16x128xbf16>
    %25 = vector.shape_cast %24 : vector<16x16x128xbf16> to vector<256x128xbf16>
    %26 = vector.extract_strided_slice %17 {offsets = [1, 1, 0], sizes = [16, 16, 128], strides = [1, 1, 1]} : vector<18x18x128xbf16> to vector<16x16x128xbf16>
    %27 = vector.shape_cast %26 : vector<16x16x128xbf16> to vector<256x128xbf16>
    %28 = vector.extract_strided_slice %17 {offsets = [1, 2, 0], sizes = [16, 16, 128], strides = [1, 1, 1]} : vector<18x18x128xbf16> to vector<16x16x128xbf16>
    %29 = vector.shape_cast %28 : vector<16x16x128xbf16> to vector<256x128xbf16>
    %30 = vector.extract_strided_slice %17 {offsets = [2, 0, 0], sizes = [16, 16, 128], strides = [1, 1, 1]} : vector<18x18x128xbf16> to vector<16x16x128xbf16>
    %31 = vector.shape_cast %30 : vector<16x16x128xbf16> to vector<256x128xbf16>
    %32 = vector.extract_strided_slice %17 {offsets = [2, 1, 0], sizes = [16, 16, 128], strides = [1, 1, 1]} : vector<18x18x128xbf16> to vector<16x16x128xbf16>
    %33 = vector.shape_cast %32 : vector<16x16x128xbf16> to vector<256x128xbf16>
    %34 = vector.extract_strided_slice %17 {offsets = [2, 2, 0], sizes = [16, 16, 128], strides = [1, 1, 1]} : vector<18x18x128xbf16> to vector<16x16x128xbf16>
    %35 = vector.shape_cast %34 : vector<16x16x128xbf16> to vector<256x128xbf16>
    %36 = tpu.concatenate %19, %21, %23, %25, %27, %29, %31, %33, %35 in 1 : vector<256x128xbf16>, vector<256x128xbf16>, vector<256x128xbf16>, vector<256x128xbf16>, vector<256x128xbf16>, vector<256x128xbf16>, vector<256x128xbf16>, vector<256x128xbf16>, vector<256x128xbf16> -> vector<256x1152xbf16>
    %c0_10 = arith.constant 0 : index
    %c0_11 = arith.constant 0 : index
    %37 = vector.load %arg4[%c0_10, %c0_11] : memref<1152x128xbf16, #tpu.memory_space<vmem>>, vector<1152x128xbf16>
    %cst_12 = arith.constant dense<0.000000e+00> : vector<256x128xf32>
    %38 = tpu.matmul %36, %37, %cst_12 {dimension_numbers = #tpu.dot_dimension_numbers<[1], [0], [0], [1], [0, 0, 1, 1], [], []>} : vector<256x1152xbf16>, vector<1152x128xbf16>, vector<256x128xf32> -> vector<256x128xf32>
    %c0_13 = arith.constant 0 : index
    %c0_14 = arith.constant 0 : index
    %39 = vector.load %arg5[%c0_13, %c0_14] : memref<1x128xf32, #tpu.memory_space<vmem>>, vector<1x128xf32>
    %40 = vector.broadcast %39 : vector<1x128xf32> to vector<256x128xf32>
    %41 = arith.addf %38, %40 : vector<256x128xf32>
    %cst_15 = arith.constant 0.000000e+00 : f32
    %42 = vector.broadcast %cst_15 : f32 to vector<256x128xf32>
    %43 = arith.cmpf ogt, %41, %42 : vector<256x128xf32>
    %cst_16 = arith.constant 0.00999999977 : f32
    %44 = vector.broadcast %cst_16 : f32 to vector<256x128xf32>
    %45 = arith.mulf %44, %41 : vector<256x128xf32>
    %46 = arith.select %43, %41, %45 : vector<256x128xi1>, vector<256x128xf32>
    %c0_17 = arith.constant 0 : index
    %c0_18 = arith.constant 0 : index
    %c0_19 = arith.constant 0 : index
    %47 = vector.load %arg6[%c0_17, %c0_18, %c0_19] : memref<1x256x128xf32, #tpu.memory_space<vmem>>, vector<1x256x128xf32>
    %48 = vector.shape_cast %47 : vector<1x256x128xf32> to vector<256x128xf32>
    %49 = vector.shape_cast %46 : vector<256x128xf32> to vector<1x256x128xf32>
    tpu.vector_store %arg6[%c0_17, %c0_18, %c0_19], %49 {strides = array<i32>} : memref<1x256x128xf32, #tpu.memory_space<vmem>>, vector<1x256x128xf32>,
    return
  }
  func.func @transform_0(%arg0: i32) -> (i32, i32, i32) {
    %c0_i32 = arith.constant 0 : i32
    %c0_i32_0 = arith.constant 0 : i32
    %c0_i32_1 = arith.constant 0 : i32
    return %arg0, %c0_i32, %c0_i32_0 : i32, i32, i32
  }
  func.func @transform_1(%arg0: i32) -> (i32, i32) {
    %c0_i32 = arith.constant 0 : i32
    %c0_i32_0 = arith.constant 0 : i32
    %c0_i32_1 = arith.constant 0 : i32
    return %c0_i32, %c0_i32_0 : i32, i32
  }
  func.func @transform_2(%arg0: i32) -> (i32, i32) {
    %c0_i32 = arith.constant 0 : i32
    %c0_i32_0 = arith.constant 0 : i32
    %c0_i32_1 = arith.constant 0 : i32
    return %c0_i32, %c0_i32_0 : i32, i32
  }
  func.func @transform_3(%arg0: i32) -> (i32, i32) {
    %c0_i32 = arith.constant 0 : i32
    %c0_i32_0 = arith.constant 0 : i32
    %c0_i32_1 = arith.constant 0 : i32
    return %c0_i32, %c0_i32_0 : i32, i32
  }
  func.func @transform_4(%arg0: i32) -> (i32, i32) {
    %c0_i32 = arith.constant 0 : i32
    %c0_i32_0 = arith.constant 0 : i32
    %c0_i32_1 = arith.constant 0 : i32
    return %c0_i32, %c0_i32_0 : i32, i32
  }
  func.func @transform_5(%arg0: i32) -> (i32, i32, i32) {
    %c0_i32 = arith.constant 0 : i32
    %c0_i32_0 = arith.constant 0 : i32
    %c0_i32_1 = arith.constant 0 : i32
    return %arg0, %c0_i32, %c0_i32_0 : i32, i32, i32
  }
}

</mosaic_0001>

<bundles_post_ra>
// kernel: tpu_custom_call.1
= control target key start
LH: loop header
LB: loop body
LE: loop exit
PB: predicated region body
PF: predicated region fallthrough
CT: control target
= control target key end

     0   :  { %10 = vsyncpa [#allocation3], 0  ;;  %s5005_s0 = inlined_call_operand.hbm [shape: f32[2,256,128], index: 0, kind: input, shape index: {}]   ;;  %s5006_s1 = inlined_call_operand.hbm [shape: f32[128,128], index: 1, kind: input, shape index: {}]   ;;  %s5007_s2 = inlined_call_operand.vmem [shape: f32[1,128], index: 2, kind: input, shape index: {}]   ;;  %s5008_s3 = inlined_call_operand.hbm [shape: bf16[1152,128], index: 3, kind: input, shape index: {}]   ;;  %s5009_s4 = inlined_call_operand.vmem [shape: f32[1,128], index: 4, kind: input, shape index: {}]   ;;  %s5010_s5 = inlined_call_operand.hbm [shape: f32[2,256,128], index: 5, kind: output, shape index: {}]  }
   0x1   :  { %12 = vsyncpa [#allocation3 + $0x1], 0 }
   0x2   :  { %13 = vsyncpa [#allocation6], 0 }
   0x3   :  { %14 = vsyncpa [#allocation4], 0 }
   0x4   :  { %16 = vsyncpa [#allocation4 + $0x1], 0  ;;  %s3921_s18 = smov 0   ;;  %s3923_s19 = smov 0  }
   0x5   :  { %s3925_s20 = smov 0   ;;  %s3927_s21 = smov 0  }
   0x6 LB: > { %s3942_s22 = sadd.s32 4294967295, %s3878_s21   ;;  %s2802_s23 = sadd.s32 4294967294, %s3878_s21   ;;  %s3878_s21 = sphi %s3927_s21, %s5035_s21   ;;  %s3874_s20 = sphi %s3925_s20, %s5034_s20   ;;  %s3870_s19 = sphi %s3923_s19, %s5033_s19   ;;  %s3866_s18 = sphi %s3921_s18, %s5032_s18  }
   0x7   : > { %p42_p0 = scmp.ne.s32.totalorder %s3870_s19, %s3866_s18  ;;  %p5011_p1 = scmp.eq.s32.totalorder %s3942_s22, 0 }
   0x8   : > { %p156_p3 = scmp.eq.s32.totalorder %s2802_s23, 1  ;;  %p2803_p5 = scmp.ge.s32.totalorder %s3878_s21, 1 }
   0x9   : > { %p3951_p4 = por %p5011_p1, %p42_p0  ;;  %p163_p7 = scmp.lt.s32.totalorder %s3878_s21, 3 }
   0xa   : > { %p3956_p6 = por %p156_p3, %p42_p0  ;;  %s3880_s27 = smov [#allocation5]  }
   0xb   : > { %s5015_s24 = scalar_select %p3951_p4, 1, 0 }
   0xc   : > { %s5016_s25 = scalar_select %p3956_p6, 1, 0 }
   0xd   : > { %p3961_p8 = pnand %p2803_p5, %p163_p7  ;;  %s175_s28 = sshll.u32 %s3880_s27, 4  ;;  %s3965_s28 = int_to_ptr.vmem [resolvable:$true] %s175_s28 }
   0xe   : > { %s3881_s30 = smov [#allocation7]   ;;  %s3722_s9 = scalar_lea.hbm %s5006_s1, 2048 }
   0xf   : > { %p3588_p9 = pneg %p3961_p8  ;;  %s191_s6 = sshll.u32 %s3881_s30, 4  ;;  %s3976_s6 = int_to_ptr.vmem [resolvable:$true] %s191_s6 }
  0x10   : > { %p3723_p12 = scmp.ne.s32.totalorder %s5006_s1, %s3722_s9  ;;  %p3729_p5 = scmp.lt.u32.totalorder %s3722_s9, %s5006_s1 }
  0x11   : > { %p3972_p11 = pnand %p3588_p9, %p5011_p1 }
  0x13   : > { %p3724_p13 = pneg %p3972_p11 }
  0x15   : > { %p3725_p0 = pnand %p3724_p13, %p3723_p12 }
  0x17   : > { %p3726_p3 = pneg %p3725_p0 }
  0x19   : > { %p3731_p7 = pnand %p3729_p5, %p3726_p3 }
  0x1b   : > { %3734 = shalt.err (!%p3731_p7)
}
  0x1c   : > { %s3735_s14 = scalar_lea.vmem %s3965_s28, 2048  ;;  %p3743_p2 = scmp.lt.s32.totalorder %s3965_s28, %s3965_s28 }
  0x1d   : > { %p3736_p9 = scmp.ne.s32.totalorder %s3965_s28, %s3735_s14  ;;  %p3744_p12 = scmp.lt.s32.totalorder %s3735_s14, %s3735_s14 }
  0x1f   : > { %p3738_p10 = pnand %p3736_p9, %p3724_p13  ;;  %p3745_p0 = por %p3744_p12, %p3743_p2 }
  0x21   : > { %p3739_p1 = pneg %p3738_p10 }
  0x23   : > { %p3746_p6 = pnand %p3745_p0, %p3739_p1 }
  0x25   : > { %3749 = shalt.err (!%p3746_p6)
}
  0x26   : > { %s3882_s15 = smov 128   ;;  %s3883_s16 = smov 8  }
  0x27   : > { %3591 = dma.hbm_to_vmem [thread:$0]  (!%p3972_p11), %s5006_s1, 2048, %s3965_s28, [#allocation6], %s3882_s15, %s3882_s15, %s3883_s16  }
  0x28   : > { %s3750_s7 = scalar_lea.hbm %s5008_s3, 9216 }
  0x29   : > { %p3751_p1 = scmp.ne.s32.totalorder %s5008_s3, %s3750_s7  ;;  %p3757_p10 = scmp.lt.u32.totalorder %s3750_s7, %s5008_s3 }
  0x2b   : > { %p3753_p2 = pnand %p3751_p1, %p3724_p13 }
  0x2d   : > { %p3754_p6 = pneg %p3753_p2 }
  0x2f   : > { %p3759_p3 = pnand %p3757_p10, %p3754_p6 }
  0x31   : > { %3762 = shalt.err (!%p3759_p3)
}
  0x32   : > { %s3763_s28 = scalar_lea.vmem %s3976_s6, 9216  ;;  %p3771_p12 = scmp.lt.s32.totalorder %s3976_s6, %s3976_s6 }
  0x33   : > { %p3764_p5 = scmp.ne.s32.totalorder %s3976_s6, %s3763_s28  ;;  %p3772_p0 = scmp.lt.s32.totalorder %s3763_s28, %s3763_s28 }
  0x35   : > { %p3766_p7 = pnand %p3764_p5, %p3724_p13  ;;  %p3773_p1 = por %p3772_p0, %p3771_p12 }
  0x37   : > { %p3767_p9 = pneg %p3766_p7 }
  0x39   : > { %p3774_p2 = pnand %p3773_p1, %p3767_p9 }
  0x3b   : > { %3777 = shalt.err (!%p3774_p2)
}
  0x3c   : > { %s3884_s12 = smov 64   ;;  %s3885_s13 = smov 4  }
  0x3d   : > { %3594 = dma.hbm_to_vmem [thread:$0]  (!%p3972_p11), %s5008_s3, 9216, %s3976_s6, [#allocation6], %s3884_s12, %s3884_s12, %s3885_s13  }
  0x3e   : > { %s4034_s23 = sadd.s32 1, %s3878_s21   ;;  %s29_s30 = sadd.s32 1, %s3874_s20 }
  0x3f   : > { %s26_s27 = ssub.s32 %s3878_s21, %s4034_s23  ;;  %p36_p6 = scmp.ne.s32.totalorder %s3874_s20, %s3870_s19 }
  0x40   : > { %p27_p13 = scmp.eq.s32.totalorder %s26_s27, 0  ;;  %p37_p10 = scmp.eq.s32.totalorder %s3878_s21, 0 }
  0x41   : > { %p5019_p5 = scmp.eq.s32.totalorder %s3942_s22, 1  ;;  %p3605_p9 = scmp.lt.s32.totalorder %s3878_s21, 2 }
  0x42   : > { %s4043_s7 = scalar_select %p27_p13, %s3874_s20, %s29_s30  }
  0x43   : > { %p38_p3 = por %p37_p10, %p36_p6  ;;  %p4047_p7 = por %p5019_p5, %p36_p6 }
  0x44   : > { %s208_s29 = sand.u32 1, %s3874_s20   ;;  %s2894_s6 = sshll.u32 %s3878_s21, 12 }
  0x45   : > { %s5020_s8 = scalar_select %p4047_p7, 1, 0 }
  0x46   : > { %s2807_s9 = sshll.u32 %s208_s29, 8  ;;  %s4057_s28 = scalar_lea.hbm %s5005_s0, %s2894_s6 }
  0x47   : > { %s212_s12 = scalar_lea.vmem [#allocation2], %s2807_s9  ;;  %p4061_p11 = pnand %p3605_p9, %p38_p3 }
  0x48   : > { %s219_s13 = sshll.u32 %s212_s12, 4  ;;  %s4065_s17 = scalar_lea.sflag [#allocation3], %s208_s29  ;;  %s4059_s13 = int_to_ptr.vmem [resolvable:$true] %s219_s13 }
  0x49   : > { %s3778_s27 = scalar_lea.hbm %s4057_s28, 4096  ;;  %p3780_p0 = pneg %p4061_p11 }
  0x4a   : > { %p3779_p12 = scmp.ne.s32.totalorder %s4057_s28, %s3778_s27  ;;  %s3783_s6 = scalar_lea.hbm %s5005_s0, 8192 }
  0x4b   : > { %p3784_p13 = scmp.lt.u32.totalorder %s4057_s28, %s5005_s0  ;;  %p3785_p6 = scmp.lt.u32.totalorder %s3783_s6, %s3778_s27 }
  0x4c   : > { %p3781_p1 = pnand %p3780_p0, %p3779_p12  ;;  %p3787_p3 = scmp.lt.u32.totalorder %s3778_s27, %s4057_s28 }
  0x4d   : > { %p3786_p10 = por %p3785_p6, %p3784_p13 }
  0x4e   : > { %p3782_p2 = pneg %p3781_p1 }
  0x4f   : > { %p3788_p5 = por %p3787_p3, %p3786_p10 }
  0x51   : > { %p3789_p9 = pnand %p3788_p5, %p3782_p2 }
  0x53   : > { %3792 = shalt.err (!%p3789_p9)
}
  0x54   : > { %s3793_s29 = scalar_lea.vmem %s4059_s13, 4096  ;;  %s3886_s12 = smov [#allocation2]  }
  0x55   : > { %p3794_p12 = scmp.ne.s32.totalorder %s4059_s13, %s3793_s29  ;;  %s3798_s30 = sshll.u32 %s3886_s12, 4  ;;  %s3799_s30 = int_to_ptr.vmem [resolvable:$false] %s3798_s30 }
  0x56   : > { %s3800_s9 = scalar_lea.vmem %s3799_s30, 8192  ;;  %p3801_p4 = scmp.lt.s32.totalorder %s4059_s13, %s3799_s30 }
  0x57   : > { %p3796_p1 = pnand %p3794_p12, %p3780_p0  ;;  %p3802_p13 = scmp.lt.s32.totalorder %s3800_s9, %s3793_s29 }
  0x59   : > { %p3797_p7 = pneg %p3796_p1  ;;  %p3803_p6 = por %p3802_p13, %p3801_p4 }
  0x5b   : > { %p3804_p10 = pnand %p3803_p6, %p3797_p7 }
  0x5d   : > { %3807 = shalt.err (!%p3804_p10)
}
  0x5e   : > { %3598 = dma.hbm_to_vmem [thread:$0]  (!%p4061_p11), %s4057_s28, 4096, %s4059_s13, %s4065_s17, %s3882_s15, %s3882_s15, %s3883_s16  }
  0x5f   : > { %231 = sbr.rel (%p3961_p8) target bundleno = 920 (0x398), region = 40 }
  0x66   : > { %s4099_s27 = sand.u32 1, %s3870_s19   ;;  %p5022_p4 = scmp.ne.s32.totalorder %s5015_s24, 0 }
  0x67   : > { %s2811_s6 = sshll.u32 %s4099_s27, 8  ;;  %s234_s10 = scalar_lea.sflag [#allocation3], %s4099_s27 }
  0x68   : > { %s4105_s14 = scalar_lea.vmem [#allocation2], %s2811_s6 }
  0x69   : > { %3853 = dma.done.wait (%p5022_p4), %s234_s10, 4096  }
  0x6a   : > { %3855 = vsyncadd (%p5022_p4), %s234_s10, 4294963200  ;;  %p5023_p7 = scmp.eq.s32.totalorder %s3942_s22, 0 }
  0x6c   : > { %3857 = dma.done.wait (%p5023_p7), [#allocation6], 11264   ;;  %p5024_p8 = pmov %p5023_p7 }
  0x6d   : > { %v305_v0 = vld [vmem:[#allocation5] sm:$0xff]  ;;  %v306_v1 = vld [vmem:[#allocation5 + $0x8] sm:$0xff]  ;;  %v307_v2 = vld [vmem:[#allocation5 + $0x10] sm:$0xff]  ;;  %vm818_vm0 = vcmask 1040384   ;;  %vm819_vm1 = vsmask.f32 256 }
  0x6e   : > { %3859 = vsyncadd (%p5024_p8), [#allocation6], 4294956032  ;;  %v3544_v3 = vpack.c.bf16 %v306_v1, %v305_v0  ;;  %v308_v4 = vld [vmem:[#allocation5 + $0x18] sm:$0xff]  ;;  %v309_v6 = vld [vmem:[#allocation5 + $0x20] sm:$0xff]  ;;  %vm855_vm3 = vsmask.f32 7424 }
  0x6f   : > { %v3548_v5 = vpack.c.bf16 %v308_v4, %v307_v2  ;;  %v310_v7 = vld [vmem:[#allocation5 + $0x28] sm:$0xff]  ;;  %v273_v9 = vld [vmem:[%s4105_s14] sm:$0xff]  ;;  %v311_v10 = vld [vmem:[#allocation5 + $0x30] sm:$0xff]  ;;  %vm1096_vm8 = vcmask 1046528   ;;  %s4892_s28 = scalar_lea.vmem [#allocation8], %s2811_s6  ;;  %s2895_s13 = sshll.u32 %s3942_s22, 12 }
  0x70   : > { %3545 = vmatprep.subr.bf16.mxu0 %v3544_v3  ;;  %v3552_v8 = vpack.c.bf16 %v310_v7, %v309_v6  ;;  %v312_v11 = vld [vmem:[#allocation5 + $0x38] sm:$0xff]  ;;  %3448 = vmatprep.mubr.f32.mxu0 %v273_v9  ;;  %v313_v13 = vld [vmem:[#allocation5 + $0x40] sm:$0xff]  ;;  %v314_v14 = vld [vmem:[#allocation5 + $0x48] sm:$0xff]  ;;  %s2710_s17 = sshll.u32 %s4892_s28, 4  ;;  %s4956_s22 = scalar_lea.hbm %s5010_s5, %s2895_s13  ;;  %s4958_s17 = int_to_ptr.vmem [resolvable:$true] %s2710_s17 }
  0x71   : > { %3547 = vmatpush3.bf16.msra.mxu0 %v3544_v3  ;;  %v3556_v12 = vpack.c.bf16 %v312_v11, %v311_v10  ;;  %v3560_v15 = vpack.c.bf16 %v314_v14, %v313_v13  ;;  %v315_v16 = vld [vmem:[#allocation5 + $0x50] sm:$0xff]  ;;  %v316_v17 = vld [vmem:[#allocation5 + $0x58] sm:$0xff]  ;;  %v317_v18 = vld [vmem:[#allocation5 + $0x60] sm:$0xff]  ;;  %v3887_v14 = vmov 0   ;;  %s2697_s12 = scalar_lea.sflag [#allocation4], %s4099_s27  ;;  %s3808_s30 = scalar_lea.vmem %s4958_s17, 4096 }
  0x72   : > { %3549 = vmatprep.subr.bf16.mxu0 %v3548_v5  ;;  %v318_v19 = vld [vmem:[#allocation5 + $0x68] sm:$0xff]  ;;  %v3650_v20 = vld [vmem:[#allocation7 + $0x40] sm:$0xff]   ;;  %v3564_v21 = vpack.c.bf16 %v316_v17, %v315_v16  ;;  %v319_v24 = vld [vmem:[#allocation5 + $0x70] sm:$0xff]  ;;  %p3809_p11 = scmp.ne.s32.totalorder %s4958_s17, %s3808_s30  ;;  %p5029_p0 = scmp.ne.s32.totalorder %s5020_s8, 0 }
  0x73   : > { %v3651_v22 = vld [vmem:[#allocation7] sm:$0xff]   ;;  %2944 = vmatprep.subr.bf16.mxu1 %v3650_v20  ;;  %v3652_v23 = vld [vmem:[#allocation7 + $0x48] sm:$0xff]   ;;  %v3568_v26 = vpack.c.bf16 %v318_v19, %v317_v18  ;;  %v320_v27 = vld [vmem:[#allocation5 + $0x78] sm:$0xff]  ;;  %s3888_s9 = smov [#allocation8]  }
  0x74   : > { %2945 = vmatpush3.bf16.msra.mxu1 %v3651_v22  ;;  %v3654_v25 = vld [vmem:[#allocation7 + $0x8] sm:$0xff]   ;;  %v3656_v28 = vld [vmem:[#allocation7 + $0x50] sm:$0xff]   ;;  %v3572_v30 = vpack.c.bf16 %v320_v27, %v319_v24  ;;  %v3660_v31 = vld [vmem:[#allocation7 + $0x58] sm:$0xff]   ;;  %p3810_p2 = pnand %p3809_p11, %p5029_p0  ;;  %s3812_s6 = sshll.u32 %s3888_s9, 4  ;;  %s3813_s6 = int_to_ptr.vmem [resolvable:$false] %s3812_s6 }
  0x75   : > { %3551 = vmatpush3.bf16.msra.mxu0 %v3548_v5  ;;  %2946 = vmatprep.subr.bf16.mxu1 %v3652_v23  ;;  %v3658_v29 = vld [vmem:[#allocation7 + $0x10] sm:$0xff]   ;;  %v3662_v32 = vld [vmem:[#allocation7 + $0x18] sm:$0xff]   ;;  %v3653_v33 = vld [vmem:[#allocation7 + $0xc0] sm:$0xff]   ;;  %s3814_s10 = scalar_lea.vmem %s3813_s6, 8192  ;;  %p3815_p5 = scmp.lt.s32.totalorder %s4958_s17, %s3813_s6 }
  0x76   : > { %3553 = vmatprep.subr.bf16.mxu0 %v3552_v8  ;;  %v274_v34 = vld [vmem:[%s4105_s14 + $0x8] sm:$0xff]  ;;  %v3664_v35 = vld [vmem:[#allocation7 + $0x60] sm:$0xff]   ;;  %v275_v36 = vld [vmem:[%s4105_s14 + $0x10] sm:$0xff]  ;;  %p3811_p3 = pneg %p3810_p2  ;;  %p3816_p9 = scmp.lt.s32.totalorder %s3814_s10, %s3808_s30 }
  0x77   : > { %v3655_v37 = vld [vmem:[#allocation7 + $0x80] sm:$0xff]   ;;  %v3657_v39 = vld [vmem:[#allocation7 + $0xc8] sm:$0xff]   ;;  %v276_v40 = vld [vmem:[%s4105_s14 + $0x18] sm:$0xff] }
  0x78   : > { %2947 = vmatpush3.bf16.msra.mxu1 %v3654_v25  ;;  %v3666_v38 = vld [vmem:[#allocation7 + $0x20] sm:$0xff]   ;;  %v3659_v41 = vld [vmem:[#allocation7 + $0x88] sm:$0xff]   ;;  %v3661_v43 = vld [vmem:[#allocation7 + $0xd0] sm:$0xff]   ;;  %p3817_p12 = por %p3816_p9, %p3815_p5 }
  0x79   : > { %3555 = vmatpush3.bf16.msra.mxu0 %v3552_v8  ;;  %2948 = vmatprep.subr.bf16.mxu1 %v3656_v28  ;;  %v277_v42 = vld [vmem:[%s4105_s14 + $0x20] sm:$0xff]  ;;  %v278_v44 = vld [vmem:[%s4105_s14 + $0x28] sm:$0xff]  ;;  %v3663_v45 = vld [vmem:[#allocation7 + $0x90] sm:$0xff]  }
  0x7a   : > { %3557 = vmatprep.subr.bf16.mxu0 %v3556_v12  ;;  %v279_v46 = vld [vmem:[%s4105_s14 + $0x30] sm:$0xff]  ;;  %v3665_v47 = vld [vmem:[#allocation7 + $0xd8] sm:$0xff]   ;;  %v281_v50 = vld [vmem:[%s4105_s14 + $0x40] sm:$0xff]  ;;  %p3818_p1 = pnand %p3817_p12, %p3811_p3 }
  0x7b   : > { %v280_v48 = vld [vmem:[%s4105_s14 + $0x38] sm:$0xff]  ;;  %v282_v51 = vld [vmem:[%s4105_s14 + $0x48] sm:$0xff]  ;;  %v283_v52 = vld [vmem:[%s4105_s14 + $0x50] sm:$0xff] }
  0x7c   : > { %2949 = vmatpush3.bf16.msra.mxu1 %v3658_v29  ;;  %v3667_v49 = vld [vmem:[#allocation7 + $0x98] sm:$0xff]   ;;  %v285_v54 = vld [vmem:[%s4105_s14 + $0x60] sm:$0xff]  ;;  %v286_v55 = vld [vmem:[%s4105_s14 + $0x68] sm:$0xff] }
  0x7d   : > { %3559 = vmatpush3.bf16.msra.mxu0 %v3556_v12  ;;  %2950 = vmatprep.subr.bf16.mxu1 %v3660_v31  ;;  %v284_v53 = vld [vmem:[%s4105_s14 + $0x58] sm:$0xff]  ;;  %v287_v56 = vld [vmem:[%s4105_s14 + $0x70] sm:$0xff]  ;;  %v289_v58 = vld [vmem:[%s4105_s14 + $0x80] sm:$0xff] }
  0x7e   : > { %3561 = vmatprep.subr.bf16.mxu0 %v3560_v15  ;;  %v288_v57 = vld [vmem:[%s4105_s14 + $0x78] sm:$0xff]  ;;  %v290_v59 = vld [vmem:[%s4105_s14 + $0x88] sm:$0xff]  ;;  %v291_v60 = vld [vmem:[%s4105_s14 + $0x90] sm:$0xff] }
  0x7f   : > { %v292_v61 = vld [vmem:[%s4105_s14 + $0x98] sm:$0xff]  ;;  %v293_v62 = vld [vmem:[%s4105_s14 + $0xa0] sm:$0xff]  ;;  %v294_v63 = vld [vmem:[%s4105_s14 + $0xa8] sm:$0xff] }
  0x80   : > { %2951 = vmatpush3.bf16.msra.mxu1 %v3662_v32  ;;  %v295_v0 = vld [vmem:[%s4105_s14 + $0xb0] sm:$0xff]  ;;  %v296_v1 = vld [vmem:[%s4105_s14 + $0xb8] sm:$0xff]  ;;  %v297_v2 = vld [vmem:[%s4105_s14 + $0xc0] sm:$0xff] }
  0x81   : > { %3563 = vmatpush3.bf16.msra.mxu0 %v3560_v15  ;;  %2952 = vmatprep.subr.bf16.mxu1 %v3664_v35  ;;  %v298_v3 = vld [vmem:[%s4105_s14 + $0xc8] sm:$0xff]  ;;  %v299_v4 = vld [vmem:[%s4105_s14 + $0xd0] sm:$0xff]  ;;  %v300_v5 = vld [vmem:[%s4105_s14 + $0xd8] sm:$0xff]  ;;  %v668_v15 = vrot.slane %v3887_v14, 7 }
  0x82   : > { %3565 = vmatprep.subr.bf16.mxu0 %v3564_v21  ;;  %v301_v6 = vld [vmem:[%s4105_s14 + $0xe0] sm:$0xff]  ;;  %v302_v7 = vld [vmem:[%s4105_s14 + $0xe8] sm:$0xff]  ;;  %v303_v8 = vld [vmem:[%s4105_s14 + $0xf0] sm:$0xff] }
  0x83   : > { %v304_v9 = vld [vmem:[%s4105_s14 + $0xf8] sm:$0xff]  ;;  %v3668_v10 = vld [vmem:[#allocation7 + $0x68] sm:$0xff]   ;;  %v3669_v11 = vld [vmem:[#allocation7 + $0xe0] sm:$0xff]  }
  0x84   : > { %2953 = vmatpush3.bf16.msra.mxu1 %v3666_v38  ;;  %v3670_v12 = vld [vmem:[#allocation7 + $0x28] sm:$0xff]   ;;  %v3671_v13 = vld [vmem:[#allocation7 + $0xa0] sm:$0xff]   ;;  %v3672_v16 = vld [vmem:[#allocation7 + $0x70] sm:$0xff]  }
  0x85   : > { %3567 = vmatpush3.bf16.msra.mxu0 %v3564_v21  ;;  %2954 = vmatprep.subr.bf16.mxu1 %v3668_v10  ;;  %v3673_v17 = vld [vmem:[#allocation7 + $0xe8] sm:$0xff]   ;;  %vm4147_vm2 = vmand %vm818_vm0, %vm819_vm1  ;;  %v3674_v19 = vld [vmem:[#allocation7 + $0x30] sm:$0xff]  }
  0x86   : > { %3569 = vmatprep.subr.bf16.mxu0 %v3568_v26  ;;  %v3675_v20 = vld [vmem:[#allocation7 + $0xa8] sm:$0xff]   ;;  %v4153_v21 = vsel %vm4147_vm2, 0, %v668_v15  ;;  %v4158_v23 = vsel %vm4147_vm2, %v668_v15, 0  ;;  %v3676_v24 = vld [vmem:[#allocation7 + $0x78] sm:$0xff]   ;;  %v3677_v25 = vld [vmem:[#allocation7 + $0xf0] sm:$0xff]  }
  0x87   : > { %v859_v22 = vshll.u32 %v4153_v21, 16  ;;  %v864_v28 = vshll.u32 %v4158_v23, 16  ;;  %v3678_v29 = vld [vmem:[#allocation7 + $0x38] sm:$0xff]   ;;  %v3684_v38 = vld [vmem:[#allocation7 + $0x148] sm:$0xff]  }
  0x88   : > { %2955 = vmatpush3.bf16.msra.mxu1 %v3670_v12  ;;  %v3681_v35 = vld [vmem:[#allocation7 + $0xb8] sm:$0xff]  }
  0x89   : > { %3571 = vmatpush3.bf16.msra.mxu0 %v3568_v26  ;;  %2956 = vmatprep.subr.bf16.mxu1 %v3672_v16  ;;  %v857_v26 = vshrl.u32 %v4153_v21, 16  ;;  %v861_v27 = vrot.slane %v859_v22, 1  ;;  %v866_v32 = vrot.slane %v864_v28, 1  ;;  %v4183_v28 = vld [vmem:[#allocation7 + $0x200] sm:$0xff]  }
  0x8a   : > { %3573 = vmatprep.subr.bf16.mxu0 %v3572_v30 }
  0x8b   : > { %v862_v31 = vor.u32 %v861_v27, %v857_v26 }
  0x8c   : > { %2957 = vmatpush3.bf16.msra.mxu1 %v3674_v19 }
  0x8d   : > { %3575 = vmatpush3.bf16.msra.mxu0 %v3572_v30  ;;  %v3679_v30 = vld [vmem:[#allocation7 + $0xb0] sm:$0xff]   ;;  %2958 = vmatprep.subr.bf16.mxu1 %v3676_v24 }
  0x8e   : > { %3056 = vmatprep.subr.bf16.mxu0 %v3653_v33  ;;  %v4163_v33 = vsel %vm855_vm3, %v862_v31, %v866_v32 }
  0x8f   : > { %1795 = vmatprep.mubr.bf16.mxu1 %v4163_v33 }
  0x90   : > { %3449 = vmatmul.mubr.f32.vlgmr.msra.gmra.mrb[0].mxu0 %v274_v34  ;;  %2959 = vmatpush3.bf16.msra.mxu1 %v3678_v29  ;;  %v3680_v34 = vld [vmem:[#allocation7 + $0xf8] sm:$0xff]  }
  0x91   : > { %3451 = vmatprep.mubr.f32.mxu0 %v275_v36  ;;  %3057 = vmatpush3.bf16.msra.mxu0 %v3655_v37  ;;  %v3682_v36 = vld [vmem:[#allocation7 + $0x140] sm:$0xff]  }
  0x92   : > { %3058 = vmatprep.subr.bf16.mxu0 %v3657_v39  ;;  %v3683_v37 = vld [vmem:[#allocation7 + $0x100] sm:$0xff]   ;;  %3168 = vmatprep.subr.bf16.mxu1 %v3682_v36  ;;  %v3685_v39 = vld [vmem:[#allocation7 + $0x108] sm:$0xff]  }
  0x93   : > { %1796 = vmatmul.mubr.bf16.vlgmr.msra.gmra.mrb[0].mxu1 %v4153_v21 }
  0x94   : > { %3452 = vmatmul.mubr.f32.gmra.mrb[2].mxu0 %v276_v40  ;;  %3169 = vmatpush3.bf16.msra.mxu1 %v3683_v37  ;;  %v3686_v40 = vld [vmem:[#allocation7 + $0x150] sm:$0xff]  }
  0x95   : > { %3454 = vmatprep.mubr.f32.mxu0 %v277_v42  ;;  %3059 = vmatpush3.bf16.msra.mxu0 %v3659_v41  ;;  %v3687_v41 = vld [vmem:[#allocation7 + $0x110] sm:$0xff]   ;;  %v3688_v42 = vld [vmem:[#allocation7 + $0x158] sm:$0xff]  }
  0x96   : > { %3060 = vmatprep.subr.bf16.mxu0 %v3661_v43  ;;  %3170 = vmatprep.subr.bf16.mxu1 %v3684_v38  ;;  %v3689_v43 = vld [vmem:[#allocation7 + $0x118] sm:$0xff]  }
  0x98   : > { %3455 = vmatmul.mubr.f32.gmra.mrb[4].mxu0 %v278_v44  ;;  %3171 = vmatpush3.bf16.msra.mxu1 %v3685_v39  ;;  %v3690_v44 = vld [vmem:[#allocation7 + $0x1c0] sm:$0xff]   ;;  %v3694_v39 = vld [vmem:[#allocation7 + $0x1c8] sm:$0xff]  }
  0x99   : > { %3457 = vmatprep.mubr.f32.mxu0 %v279_v46  ;;  %3061 = vmatpush3.bf16.msra.mxu0 %v3663_v45  ;;  %v3692_v45 = vld [vmem:[#allocation7 + $0x160] sm:$0xff]  }
  0x9a   : > { %3062 = vmatprep.subr.bf16.mxu0 %v3665_v47  ;;  %3172 = vmatprep.subr.bf16.mxu1 %v3686_v40  ;;  %v3693_v46 = vld [vmem:[#allocation7 + $0x120] sm:$0xff]   ;;  %v3696_v47 = vld [vmem:[#allocation7 + $0x168] sm:$0xff]  }
  0x9c   : > { %3458 = vmatmul.mubr.f32.gmra.mrb[6].mxu0 %v280_v48  ;;  %3173 = vmatpush3.bf16.msra.mxu1 %v3687_v41  ;;  %v3697_v48 = vld [vmem:[#allocation7 + $0x128] sm:$0xff]  }
  0x9d   : > { %3460 = vmatprep.mubr.f32.mxu0 %v281_v50  ;;  %3063 = vmatpush3.bf16.msra.mxu0 %v3667_v49  ;;  %v3700_v49 = vld [vmem:[#allocation7 + $0x170] sm:$0xff]  }
  0x9e   : > { %3064 = vmatprep.subr.bf16.mxu0 %v3669_v11  ;;  %3174 = vmatprep.subr.bf16.mxu1 %v3688_v42  ;;  %v3701_v50 = vld [vmem:[#allocation7 + $0x130] sm:$0xff]  }
  0xa0   : > { %3461 = vmatmul.mubr.f32.gmra.mrb[8].mxu0 %v282_v51  ;;  %3175 = vmatpush3.bf16.msra.mxu1 %v3689_v43  ;;  %v3704_v51 = vld [vmem:[#allocation7 + $0x178] sm:$0xff]  }
  0xa1   : > { %3463 = vmatprep.mubr.f32.mxu0 %v283_v52  ;;  %3065 = vmatpush3.bf16.msra.mxu0 %v3671_v13  ;;  %v4170_v52 = vld [vmem:[%s5007_s2] ss:$0 sm:$0xff] }
  0xa2   : > { %3066 = vmatprep.subr.bf16.mxu0 %v3673_v17  ;;  %3176 = vmatprep.subr.bf16.mxu1 %v3692_v45 }
  0xa4   : > { %3464 = vmatmul.mubr.f32.gmra.mrb[10].mxu0 %v284_v53  ;;  %3177 = vmatpush3.bf16.msra.mxu1 %v3693_v46 }
  0xa5   : > { %3466 = vmatprep.mubr.f32.mxu0 %v285_v54  ;;  %3067 = vmatpush3.bf16.msra.mxu0 %v3675_v20 }
  0xa6   : > { %3068 = vmatprep.subr.bf16.mxu0 %v3677_v25  ;;  %3178 = vmatprep.subr.bf16.mxu1 %v3696_v47 }
  0xa8   : > { %3467 = vmatmul.mubr.f32.gmra.mrb[12].mxu0 %v286_v55  ;;  %3179 = vmatpush3.bf16.msra.mxu1 %v3697_v48 }
  0xa9   : > { %3469 = vmatprep.mubr.f32.mxu0 %v287_v56  ;;  %3069 = vmatpush3.bf16.msra.mxu0 %v3679_v30 }
  0xaa   : > { %3070 = vmatprep.subr.bf16.mxu0 %v3680_v34  ;;  %3180 = vmatprep.subr.bf16.mxu1 %v3700_v49  ;;  %v3691_v34 = vld [vmem:[#allocation7 + $0x180] sm:$0xff]  }
  0xac   : > { %3470 = vmatmul.mubr.f32.gmra.mrb[14].mxu0 %v288_v57  ;;  %3181 = vmatpush3.bf16.msra.mxu1 %v3701_v50  ;;  %v3705_v57 = vld [vmem:[#allocation7 + $0x138] sm:$0xff]  }
  0xad   : > { %3472 = vmatprep.mubr.f32.mxu0 %v289_v58  ;;  %3071 = vmatpush3.bf16.msra.mxu0 %v3681_v35 }
  0xae   : > { %3280 = vmatprep.subr.bf16.mxu0 %v3690_v44  ;;  %3182 = vmatprep.subr.bf16.mxu1 %v3704_v51 }
  0xb0   : > { %3473 = vmatmul.mubr.f32.gmra.mrb[16].mxu0 %v290_v59  ;;  %3183 = vmatpush3.bf16.msra.mxu1 %v3705_v57 }
  0xb1   : > { %3475 = vmatprep.mubr.f32.mxu0 %v291_v60  ;;  %3496 = vmatprep.subr.bf16.mxu1 %v4183_v28 }
  0xb4   : > { %3476 = vmatmul.mubr.f32.gmra.mrb[18].mxu0 %v292_v61 }
  0xb5   : > { %3478 = vmatprep.mubr.f32.mxu0 %v293_v62 }
  0xb8   : > { %3479 = vmatmul.mubr.f32.gmra.mrb[20].mxu0 %v294_v63 }
  0xb9   : > { %3481 = vmatprep.mubr.f32.mxu0 %v295_v0 }
  0xbc   : > { %3482 = vmatmul.mubr.f32.gmra.mrb[22].mxu0 %v296_v1 }
  0xbd   : > { %3484 = vmatprep.mubr.f32.mxu0 %v297_v2 }
  0xc0   : > { %3485 = vmatmul.mubr.f32.gmra.mrb[24].mxu0 %v298_v3 }
  0xc1   : > { %3487 = vmatprep.mubr.f32.mxu0 %v299_v4 }
  0xc4   : > { %3488 = vmatmul.mubr.f32.gmra.mrb[26].mxu0 %v300_v5 }
  0xc5   : > { %3490 = vmatprep.mubr.f32.mxu0 %v301_v6  ;;  %v1098_v6 = vrot.slane %v4158_v23, 1 }
  0xc8   : > { %3491 = vmatmul.mubr.f32.gmra.mrb[28].mxu0 %v302_v7  ;;  %v1097_v7 = vrot.slane %v4153_v21, 1 }
  0xc9   : > { %3493 = vmatprep.mubr.f32.mxu0 %v303_v8 }
  0xca   : > { %v4181_v22 = vsel %vm1096_vm8, %v1097_v7, %v1098_v6 }
  0xcb   : > { %5027 = vst [vmem:[#allocation12_spill] sm:$0xff] %v4181_v22 }
  0xcc   : > { %3494 = vmatmul.mubr.f32.gmra.mrb[30].mxu0 %v304_v9 }
 0x163   : > { %v3450_v53 = vpop.f32.mrb[0].mxu0 }
 0x164   : > { %v400_v54 = vadd.f32 %v3450_v53, %v4170_v52  ;;  %v394_v55 = vpop.f32.mrb[1].mxu0  ;;  %v3695_v53 = vld [vmem:[#allocation7 + $0x188] sm:$0xff]  }
 0x165   : > { %v395_v56 = vadd.f32 %v4170_v52, %v394_v55 }
 0x166   : > { %vm554_vm4 = vcmp.gt.f32.partialorder %v400_v54, 0.0  ;;  %v586_v58 = vmul.f32 0.01, %v400_v54 }
 0x167   : > { %vm553_vm5 = vcmp.gt.f32.partialorder %v395_v56, 0.0  ;;  %v585_v59 = vmul.f32 0.01, %v395_v56  ;;  %v3453_v60 = vpop.f32.mrb[2].mxu0 }
 0x168   : > { %v618_v61 = vsel %vm554_vm4, %v400_v54, %v586_v58  ;;  %v410_v62 = vadd.f32 %v3453_v60, %v4170_v52  ;;  %v404_v63 = vpop.f32.mrb[3].mxu0  ;;  %v3698_v58 = vld [vmem:[#allocation7 + $0x1d0] sm:$0xff]  }
 0x169   : > { %v617_v0 = vsel %vm553_vm5, %v395_v56, %v585_v59  ;;  %v405_v1 = vadd.f32 %v4170_v52, %v404_v63 }
 0x16a   : > { %v649_v2 = vpack.c.bf16 %v618_v61, %v617_v0  ;;  %vm556_vm6 = vcmp.gt.f32.partialorder %v410_v62, 0.0  ;;  %v588_v3 = vmul.f32 0.01, %v410_v62 }
 0x16b   : > { %vm555_vm7 = vcmp.gt.f32.partialorder %v405_v1, 0.0  ;;  %v587_v4 = vmul.f32 0.01, %v405_v1  ;;  %v3456_v5 = vpop.f32.mrb[4].mxu0 }
 0x16c   : > { %v673_v8 = vshrl.u32 %v649_v2, 16  ;;  %v620_v9 = vsel %vm556_vm6, %v410_v62, %v588_v3  ;;  %v420_v10 = vadd.f32 %v3456_v5, %v4170_v52  ;;  %v414_v11 = vpop.f32.mrb[5].mxu0  ;;  %v676_v12 = vshll.u32 %v649_v2, 16 }
 0x16d   : > { %v619_v13 = vsel %vm555_vm7, %v405_v1, %v587_v4  ;;  %v415_v14 = vadd.f32 %v4170_v52, %v414_v11  ;;  %v3699_v11 = vld [vmem:[#allocation7 + $0x190] sm:$0xff]  }
 0x16e   : > { %v675_v15 = vrot.slane %v673_v8, 7  ;;  %v650_v16 = vpack.c.bf16 %v620_v9, %v619_v13  ;;  %vm558_vm9 = vcmp.gt.f32.partialorder %v420_v10, 0.0  ;;  %v590_v17 = vmul.f32 0.01, %v420_v10 }
 0x16f   : > { %vm557_vm10 = vcmp.gt.f32.partialorder %v415_v14, 0.0  ;;  %v589_v19 = vmul.f32 0.01, %v415_v14  ;;  %v3459_v20 = vpop.f32.mrb[6].mxu0 }
 0x170   : > { %v680_v23 = vshrl.u32 %v650_v16, 16  ;;  %v683_v24 = vshll.u32 %v650_v16, 16  ;;  %v622_v25 = vsel %vm558_vm9, %v420_v10, %v590_v17  ;;  %v678_v26 = vor.u32 %v676_v12, %v675_v15  ;;  %v424_v27 = vpop.f32.mrb[7].mxu0  ;;  %v3702_v17 = vld [vmem:[#allocation7 + $0x1d8] sm:$0xff]  }
 0x171   : > { %v621_v29 = vsel %vm557_vm10, %v415_v14, %v589_v19  ;;  %v430_v30 = vadd.f32 %v3459_v20, %v4170_v52  ;;  %v425_v31 = vadd.f32 %v4170_v52, %v424_v27  ;;  %v839_v32 = vsel %vm4147_vm2, %v675_v15, 0 }
 0x172   : > { %v682_v35 = vrot.slane %v680_v23, 7  ;;  %v651_v36 = vpack.c.bf16 %v622_v25, %v621_v29  ;;  %v822_v37 = vsel %vm4147_vm2, 0, %v678_v26  ;;  %v876_v38 = vshll.u32 %v839_v32, 16 }
 0x173   : > { %1956 = vmatprep.mubr.bf16.mxu0 %v822_v37  ;;  %vm560_vm11 = vcmp.gt.f32.partialorder %v430_v30, 0.0  ;;  %v592_v40 = vmul.f32 0.01, %v430_v30  ;;  %vm559_vm12 = vcmp.gt.f32.partialorder %v425_v31, 0.0  ;;  %v591_v41 = vmul.f32 0.01, %v425_v31 }
 0x174   : > { %v685_v42 = vor.u32 %v683_v24, %v682_v35  ;;  %v687_v43 = vshrl.u32 %v651_v36, 16  ;;  %v690_v44 = vshll.u32 %v651_v36, 16  ;;  %1957 = vmatmul.mubr.bf16.vlgmr.msra.gmra.mrb[32].mxu0 %v4181_v22  ;;  %v869_v45 = vshrl.u32 %v822_v37, 16  ;;  %v3462_v46 = vpop.f32.mrb[8].mxu0 }
 0x175   : > { %v624_v47 = vsel %vm560_vm11, %v430_v30, %v592_v40  ;;  %v623_v48 = vsel %vm559_vm12, %v425_v31, %v591_v41  ;;  %v871_v49 = vshll.u32 %v822_v37, 16  ;;  %v878_v50 = vrot.slane %v876_v38, 1  ;;  %v434_v51 = vpop.f32.mrb[9].mxu0  ;;  %3281 = vmatpush3.bf16.msra.mxu0 %v3691_v34  ;;  %v3706_v41 = vld [vmem:[#allocation7 + $0x1e0] sm:$0xff]  }
 0x176   : > { %v689_v54 = vrot.slane %v687_v43, 7  ;;  %v652_v55 = vpack.c.bf16 %v624_v47, %v623_v48  ;;  %v4195_v56 = vsel %vm4147_vm2, 0, %v685_v42  ;;  %v440_v57 = vadd.f32 %v3462_v46, %v4170_v52  ;;  %3282 = vmatprep.subr.bf16.mxu0 %v3694_v39 }
 0x177   : > { %1964 = vmatprep.mubr.bf16.mxu0 %v4195_v56  ;;  %v873_v59 = vrot.slane %v871_v49, 1  ;;  %v1100_v60 = vrot.slane %v822_v37, 1  ;;  %v1101_v61 = vrot.slane %v839_v32, 1  ;;  %v435_v62 = vadd.f32 %v4170_v52, %v434_v51  ;;  %v3465_v63 = vpop.f32.mrb[10].mxu0 }
 0x178   : > { %v692_v0 = vor.u32 %v690_v44, %v689_v54  ;;  %v694_v1 = vshrl.u32 %v652_v55, 16  ;;  %v697_v2 = vshll.u32 %v652_v55, 16  ;;  %vm562_vm13 = vcmp.gt.f32.partialorder %v440_v57, 0.0  ;;  %v444_v3 = vpop.f32.mrb[11].mxu0 }
 0x179   : > { %v874_v4 = vor.u32 %v873_v59, %v869_v45  ;;  %v594_v5 = vmul.f32 0.01, %v440_v57  ;;  %v4201_v6 = vsel %vm1096_vm8, %v1100_v60, %v1101_v61  ;;  %vm561_vm14 = vcmp.gt.f32.partialorder %v435_v62, 0.0  ;;  %3283 = vmatpush3.bf16.msra.mxu0 %v3695_v53 }
 0x17a   : > { %v696_v7 = vrot.slane %v694_v1, 7  ;;  %v593_v8 = vmul.f32 0.01, %v435_v62  ;;  %v840_v9 = vsel %vm4147_vm2, %v682_v35, 0  ;;  %v881_v10 = vshrl.u32 %v4195_v56, 16  ;;  %3284 = vmatprep.subr.bf16.mxu0 %v3698_v58  ;;  %v3703_v35 = vld [vmem:[#allocation7 + $0x198] sm:$0xff]  }
 0x17b   : > { %v4207_v12 = vsel %vm855_vm3, %v874_v4, %v878_v50  ;;  %v626_v13 = vsel %vm562_vm13, %v440_v57, %v594_v5  ;;  %v883_v14 = vshll.u32 %v4195_v56, 16  ;;  %v888_v15 = vshll.u32 %v840_v9, 16  ;;  %v3468_v16 = vpop.f32.mrb[12].mxu0  ;;  %v3707_v57 = vld [vmem:[#allocation7 + $0x1a0] sm:$0xff]  }
 0x17c   : > { %v699_v19 = vor.u32 %v697_v2, %v696_v7  ;;  %1803 = vmatprep.mubr.bf16.mxu1 %v4207_v12  ;;  %1965 = vmatmul.mubr.bf16.gmra.mrb[36].mxu0 %v4201_v6  ;;  %v625_v20 = vsel %vm561_vm14, %v435_v62, %v593_v8  ;;  %v4215_v23 = vsel %vm4147_vm2, 0, %v692_v0  ;;  %v450_v24 = vadd.f32 %v3465_v63, %v4170_v52  ;;  %v454_v25 = vpop.f32.mrb[13].mxu0  ;;  %v3708_v62 = vld [vmem:[#allocation7 + $0x1e8] sm:$0xff]  }
 0x17d   : > { %1804 = vmatmul.mubr.bf16.gmra.mrb[4].mxu1 %v822_v37  ;;  %v653_v26 = vpack.c.bf16 %v626_v13, %v625_v20  ;;  %v885_v27 = vrot.slane %v883_v14, 1  ;;  %v890_v29 = vrot.slane %v888_v15, 1  ;;  %1972 = vmatprep.mubr.bf16.mxu0 %v4215_v23  ;;  %v4221_v30 = vsel %vm4147_vm2, %v689_v54, 0 }
 0x17e   : > { %vm564_vm15 = vcmp.gt.f32.partialorder %v450_v24, 0.0  ;;  %v596_v31 = vmul.f32 0.01, %v450_v24  ;;  %v893_v32 = vshrl.u32 %v4215_v23, 16  ;;  %v895_v34 = vshll.u32 %v4215_v23, 16  ;;  %3285 = vmatpush3.bf16.msra.mxu0 %v3699_v11  ;;  %v3709_v11 = vld [vmem:[#allocation7 + $0x1a8] sm:$0xff]  }
 0x17f   : > { %v701_v36 = vshrl.u32 %v653_v26, 16  ;;  %v704_v38 = vshll.u32 %v653_v26, 16  ;;  %v886_v37 = vor.u32 %v885_v27, %v881_v10  ;;  %v900_v39 = vshll.u32 %v4221_v30, 16  ;;  %v3471_v40 = vpop.f32.mrb[14].mxu0  ;;  %3286 = vmatprep.subr.bf16.mxu0 %v3702_v17 }
 0x180   : > { %v628_v42 = vsel %vm564_vm15, %v450_v24, %v596_v31  ;;  %v897_v43 = vrot.slane %v895_v34, 1  ;;  %v1103_v44 = vrot.slane %v4195_v56, 1  ;;  %v1104_v45 = vrot.slane %v840_v9, 1  ;;  %v4227_v46 = vpop.f32.mrb[15].mxu0 }
 0x181   : > { %v703_v47 = vrot.slane %v701_v36, 7  ;;  %v4230_v48 = vsel %vm855_vm3, %v886_v37, %v890_v29  ;;  %v902_v49 = vrot.slane %v900_v39, 1  ;;  %v445_v50 = vadd.f32 %v4170_v52, %v444_v3  ;;  %v3711_v36 = vld [vmem:[#allocation7 + $0x1b0] sm:$0xff]  }
 0x182   : > { %1811 = vmatprep.mubr.bf16.mxu1 %v4230_v48  ;;  %v898_v51 = vor.u32 %v897_v43, %v893_v32  ;;  %v4235_v53 = vsel %vm1096_vm8, %v1103_v44, %v1104_v45  ;;  %v4239_v54 = vsel %vm4147_vm2, 0, %v699_v19  ;;  %v460_v55 = vadd.f32 %v3468_v16, %v4170_v52  ;;  %3287 = vmatpush3.bf16.msra.mxu0 %v3703_v35  ;;  %v3710_v19 = vld [vmem:[#allocation7 + $0x1f0] sm:$0xff]  }
 0x183   : > { %v706_v58 = vor.u32 %v704_v38, %v703_v47  ;;  %vm563_vm0 = vcmp.gt.f32.partialorder %v445_v50, 0.0  ;;  %v595_v59 = vmul.f32 0.01, %v445_v50  ;;  %v4244_v60 = vsel %vm4147_vm2, %v696_v7, 0  ;;  %v3474_v61 = vpop.f32.mrb[16].mxu0  ;;  %3288 = vmatprep.subr.bf16.mxu0 %v3706_v41 }
 0x184   : > { %v4247_v63 = vsel %vm855_vm3, %v898_v51, %v902_v49  ;;  %1973 = vmatmul.mubr.bf16.gmra.mrb[40].mxu0 %v4235_v53  ;;  %vm566_vm1 = vcmp.gt.f32.partialorder %v460_v55, 0.0  ;;  %v598_v0 = vmul.f32 0.01, %v460_v55  ;;  %v905_v1 = vshrl.u32 %v4239_v54, 16  ;;  %v4251_v2 = vpop.f32.mrb[17].mxu0 }
 0x185   : > { %1812 = vmatmul.mubr.bf16.gmra.mrb[8].mxu1 %v4195_v56  ;;  %v627_v3 = vsel %vm563_vm0, %v445_v50, %v595_v59  ;;  %1980 = vmatprep.mubr.bf16.mxu0 %v4239_v54  ;;  %v907_v4 = vshll.u32 %v4239_v54, 16  ;;  %v912_v5 = vshll.u32 %v4244_v60, 16  ;;  %v1106_v7 = vrot.slane %v4215_v23, 1 }
 0x186   : > { %1819 = vmatprep.mubr.bf16.mxu1 %v4247_v63  ;;  %v654_v8 = vpack.c.bf16 %v628_v42, %v627_v3  ;;  %v1107_v9 = vrot.slane %v4221_v30, 1  ;;  %v455_v10 = vadd.f32 %v4170_v52, %v454_v25  ;;  %3289 = vmatpush3.bf16.msra.mxu0 %v3707_v57  ;;  %v4263_v15 = vsel %vm4147_vm2, 0, %v706_v58  ;;  %v3712_v42 = vld [vmem:[#allocation7 + $0x1f8] sm:$0xff]  }
 0x187   : > { %v909_v13 = vrot.slane %v907_v4, 1  ;;  %v914_v14 = vrot.slane %v912_v5, 1  ;;  %v470_v16 = vadd.f32 %v3471_v40, %v4170_v52  ;;  %v4266_v17 = vpop.f32.mrb[18].mxu0  ;;  %3290 = vmatprep.subr.bf16.mxu0 %v3708_v62  ;;  %v630_v26 = vsel %vm566_vm1, %v460_v55, %v598_v0 }
 0x188   : > { %v708_v20 = vshrl.u32 %v654_v8, 16  ;;  %v711_v24 = vshll.u32 %v654_v8, 16  ;;  %vm565_vm4 = vcmp.gt.f32.partialorder %v455_v10, 0.0  ;;  %v4269_v25 = vpop.f32.mrb[19].mxu0  ;;  %v4272_v29 = vsel %vm1096_vm8, %v1106_v7, %v1107_v9 }
 0x189   : > { %v910_v27 = vor.u32 %v909_v13, %v905_v1  ;;  %v597_v30 = vmul.f32 0.01, %v455_v10  ;;  %vm568_vm5 = vcmp.gt.f32.partialorder %v470_v16, 0.0  ;;  %v4276_v32 = vsel %vm4147_vm2, %v703_v47, 0  ;;  %v3713_v1 = vld [vmem:[#allocation7 + $0x1b8] sm:$0xff]  }
 0x18a   : > { %v710_v31 = vrot.slane %v708_v20, 7  ;;  %v917_v34 = vshrl.u32 %v4263_v15, 16  ;;  %v919_v35 = vshll.u32 %v4263_v15, 16  ;;  %3291 = vmatpush3.bf16.msra.mxu0 %v3709_v11  ;;  %v600_v39 = vmul.f32 0.01, %v470_v16 }
 0x18b   : > { %v4281_v38 = vsel %vm855_vm3, %v910_v27, %v914_v14  ;;  %v629_v37 = vsel %vm565_vm4, %v455_v10, %v597_v30  ;;  %v924_v40 = vshll.u32 %v4276_v32, 16  ;;  %v4284_v41 = vpop.f32.mrb[20].mxu0  ;;  %3292 = vmatprep.subr.bf16.mxu0 %v3710_v19  ;;  %v1109_v47 = vrot.slane %v4239_v54, 1 }
 0x18c   : > { %v713_v43 = vor.u32 %v711_v24, %v710_v31  ;;  %1981 = vmatmul.mubr.bf16.gmra.mrb[44].mxu0 %v4272_v29  ;;  %v655_v44 = vpack.c.bf16 %v630_v26, %v629_v37  ;;  %v921_v45 = vrot.slane %v919_v35, 1  ;;  %v4288_v49 = vpop.f32.mrb[21].mxu0  ;;  %v1110_v51 = vrot.slane %v4244_v60, 1 }
 0x18d   : > { %1820 = vmatmul.mubr.bf16.gmra.mrb[12].mxu1 %v4215_v23  ;;  %1988 = vmatprep.mubr.bf16.mxu0 %v4263_v15  ;;  %v926_v50 = vrot.slane %v924_v40, 1  ;;  %v465_v55 = vadd.f32 %v4170_v52, %v4227_v46  ;;  %v480_v57 = vadd.f32 %v3474_v61, %v4170_v52  ;;  %v632_v3 = vsel %vm568_vm5, %v470_v16, %v600_v39 }
 0x18e   : > { %1827 = vmatprep.mubr.bf16.mxu1 %v4281_v38  ;;  %v715_v58 = vshrl.u32 %v655_v44, 16  ;;  %v718_v59 = vshll.u32 %v655_v44, 16  ;;  %v922_v62 = vor.u32 %v921_v45, %v917_v34  ;;  %v4299_v0 = vsel %vm4147_vm2, 0, %v713_v43  ;;  %3293 = vmatpush3.bf16.msra.mxu0 %v3711_v36 }
 0x18f   : > { %vm567_vm6 = vcmp.gt.f32.partialorder %v465_v55, 0.0  ;;  %v599_v60 = vmul.f32 0.01, %v465_v55  ;;  %vm570_vm7 = vcmp.gt.f32.partialorder %v480_v57, 0.0  ;;  %v4302_v4 = vpop.f32.mrb[22].mxu0  ;;  %3294 = vmatprep.subr.bf16.mxu0 %v3712_v42  ;;  %v4305_v61 = vsel %vm1096_vm8, %v1109_v47, %v1110_v51 }
 0x190   : > { %v717_v46 = vrot.slane %v715_v58, 7  ;;  %v602_v5 = vmul.f32 0.01, %v480_v57  ;;  %v4309_v7 = vsel %vm4147_vm2, %v710_v31, 0  ;;  %v4311_v8 = vpop.f32.mrb[23].mxu0  ;;  %v929_v10 = vshrl.u32 %v4299_v0, 16 }
 0x191   : > { %v631_v9 = vsel %vm567_vm6, %v465_v55, %v599_v60  ;;  %v931_v11 = vshll.u32 %v4299_v0, 16  ;;  %v936_v13 = vshll.u32 %v4309_v7, 16  ;;  %v4317_v16 = vsel %vm855_vm3, %v922_v62, %v926_v50 }
 0x192   : > { %v720_v14 = vor.u32 %v718_v59, %v717_v46  ;;  %v656_v19 = vpack.c.bf16 %v632_v3, %v631_v9  ;;  %v634_v20 = vsel %vm570_vm7, %v480_v57, %v602_v5  ;;  %3295 = vmatpush3.bf16.msra.mxu0 %v3713_v1  ;;  %v1112_v27 = vrot.slane %v4263_v15, 1 }
 0x193   : > { %v933_v24 = vrot.slane %v931_v11, 1  ;;  %v938_v26 = vrot.slane %v936_v13, 1  ;;  %v475_v30 = vadd.f32 %v4170_v52, %v4251_v2  ;;  %v4322_v31 = vpop.f32.mrb[24].mxu0  ;;  %v490_v37 = vadd.f32 %v4266_v17, %v4170_v52 }
 0x194   : > { %1989 = vmatmul.mubr.bf16.gmra.mrb[48].mxu0 %v4305_v61  ;;  %v722_v34 = vshrl.u32 %v656_v19, 16  ;;  %v725_v35 = vshll.u32 %v656_v19, 16  ;;  %v4327_v36 = vsel %vm4147_vm2, 0, %v720_v14  ;;  %v4331_v39 = vpop.f32.mrb[25].mxu0  ;;  %v1113_v40 = vrot.slane %v4276_v32, 1 }
 0x195   : > { %1828 = vmatmul.mubr.bf16.gmra.mrb[16].mxu1 %v4239_v54  ;;  %1996 = vmatprep.mubr.bf16.mxu0 %v4299_v0  ;;  %v934_v2 = vor.u32 %v933_v24, %v929_v10  ;;  %vm569_vm9 = vcmp.gt.f32.partialorder %v475_v30, 0.0  ;;  %v601_v42 = vmul.f32 0.01, %v475_v30  ;;  %v604_v44 = vmul.f32 0.01, %v490_v37 }
 0x196   : > { %1835 = vmatprep.mubr.bf16.mxu1 %v4317_v16  ;;  %v724_v43 = vrot.slane %v722_v34, 7  ;;  %vm572_vm10 = vcmp.gt.f32.partialorder %v490_v37, 0.0  ;;  %v4339_v17 = vsel %vm4147_vm2, %v717_v46, 0  ;;  %v943_v47 = vshll.u32 %v4327_v36, 16 }
 0x197   : > { %v633_v45 = vsel %vm569_vm9, %v475_v30, %v601_v42  ;;  %v4342_v50 = vpop.f32.mrb[26].mxu0  ;;  %v4347_v32 = vsel %vm855_vm3, %v934_v2, %v938_v26  ;;  %v4350_v58 = vsel %vm1096_vm8, %v1112_v27, %v1113_v40  ;;  %v941_v59 = vshrl.u32 %v4327_v36, 16 }
 0x198   : > { %v727_v51 = vor.u32 %v725_v35, %v724_v43  ;;  %v657_v55 = vpack.c.bf16 %v634_v20, %v633_v45  ;;  %v4344_v57 = vpop.f32.mrb[27].mxu0  ;;  %v485_v62 = vadd.f32 %v4170_v52, %v4269_v25  ;;  %v636_v3 = vsel %vm572_vm10, %v490_v37, %v604_v44 }
 0x199   : > { %v948_v60 = vshll.u32 %v4339_v17, 16  ;;  %v945_v9 = vrot.slane %v943_v47, 1  ;;  %v500_v25 = vadd.f32 %v4284_v41, %v4170_v52  ;;  %v4371_v20 = vsel %vm4147_vm2, %v724_v43, 0 }
 0x19a   : > { %v729_v1 = vshrl.u32 %v657_v55, 16  ;;  %v4358_v46 = vsel %vm4147_vm2, 0, %v727_v51  ;;  %v732_v5 = vshll.u32 %v657_v55, 16  ;;  %vm571_vm11 = vcmp.gt.f32.partialorder %v485_v62, 0.0 }
 0x19b   : > { %v603_v10 = vmul.f32 0.01, %v485_v62  ;;  %v4360_v11 = vpop.f32.mrb[28].mxu0  ;;  %v955_v24 = vshll.u32 %v4358_v46, 16  ;;  %v1115_v26 = vrot.slane %v4299_v0, 1  ;;  %v1116_v27 = vrot.slane %v4309_v7, 1 }
 0x19c   : > { %1997 = vmatmul.mubr.bf16.gmra.mrb[52].mxu0 %v4350_v58  ;;  %v731_v13 = vrot.slane %v729_v1, 7  ;;  %v4365_v14 = vpop.f32.mrb[29].mxu0  ;;  %v606_v30 = vmul.f32 0.01, %v500_v25  ;;  %v946_v35 = vor.u32 %v945_v9, %v941_v59  ;;  %v950_v37 = vrot.slane %v948_v60, 1 }
 0x19d   : > { %1836 = vmatmul.mubr.bf16.gmra.mrb[20].mxu1 %v4263_v15  ;;  %2004 = vmatprep.mubr.bf16.mxu0 %v4327_v36  ;;  %v635_v19 = vsel %vm571_vm11, %v485_v62, %v603_v10  ;;  %vm574_vm12 = vcmp.gt.f32.partialorder %v500_v25, 0.0  ;;  %v960_v42 = vshll.u32 %v4371_v20, 16  ;;  %v495_v43 = vadd.f32 %v4170_v52, %v4288_v49 }
 0x19e   : > { %1843 = vmatprep.mubr.bf16.mxu1 %v4347_v32  ;;  %v658_v41 = vpack.c.bf16 %v636_v3, %v635_v19  ;;  %v734_v34 = vor.u32 %v732_v5, %v731_v13  ;;  %v953_v47 = vshrl.u32 %v4358_v46, 16  ;;  %v957_v7 = vrot.slane %v955_v24, 1 }
 0x19f   : > { %v4377_v2 = vpop.f32.mrb[30].mxu0  ;;  %v510_v51 = vadd.f32 %v4302_v4, %v4170_v52  ;;  %v638_v59 = vsel %vm574_vm12, %v500_v25, %v606_v30  ;;  %vm573_vm13 = vcmp.gt.f32.partialorder %v495_v43, 0.0  ;;  %v605_v62 = vmul.f32 0.01, %v495_v43 }
 0x1a0   : > { %v736_v40 = vshrl.u32 %v658_v41, 16  ;;  %v4382_v44 = vpop.f32.mrb[31].mxu0  ;;  %v739_v45 = vshll.u32 %v658_v41, 16  ;;  %v4388_v1 = vsel %vm855_vm3, %v946_v35, %v950_v37  ;;  %v4391_v3 = vsel %vm1096_vm8, %v1115_v26, %v1116_v27 }
 0x1a1   : > { %v4395_v49 = vsel %vm4147_vm2, 0, %v734_v34  ;;  %v962_v60 = vrot.slane %v960_v42, 1  ;;  %v1118_v5 = vrot.slane %v4327_v36, 1  ;;  %v637_v4 = vsel %vm573_vm13, %v495_v43, %v605_v62 }
 0x1a2   : > { %v738_v55 = vrot.slane %v736_v40, 7  ;;  %v608_v9 = vmul.f32 0.01, %v510_v51  ;;  %v958_v10 = vor.u32 %v957_v7, %v953_v47  ;;  %v1119_v25 = vrot.slane %v4339_v17, 1 }
 0x1a3   : > { %v659_v19 = vpack.c.bf16 %v638_v59, %v637_v4  ;;  %vm576_vm14 = vcmp.gt.f32.partialorder %v510_v51, 0.0  ;;  %v4405_v26 = vsel %vm4147_vm2, %v731_v13, 0  ;;  %v967_v27 = vshll.u32 %v4395_v49, 16 }
 0x1a4   : > { %2005 = vmatmul.mubr.bf16.gmra.mrb[56].mxu0 %v4391_v3  ;;  %v741_v24 = vor.u32 %v739_v45, %v738_v55  ;;  %v505_v41 = vadd.f32 %v4170_v52, %v4311_v8  ;;  %v520_v34 = vadd.f32 %v4322_v31, %v4170_v52  ;;  %v640_v35 = vsel %vm576_vm14, %v510_v51, %v608_v9 }
 0x1a5   : > { %1844 = vmatmul.mubr.bf16.gmra.mrb[24].mxu1 %v4299_v0  ;;  %2012 = vmatprep.mubr.bf16.mxu0 %v4358_v46  ;;  %v743_v30 = vshrl.u32 %v659_v19, 16  ;;  %v4413_v37 = vsel %vm855_vm3, %v958_v10, %v962_v60  ;;  %v4416_v40 = vsel %vm1096_vm8, %v1118_v5, %v1119_v25  ;;  %v965_v13 = vshrl.u32 %v4395_v49, 16 }
 0x1a6   : > { %1851 = vmatprep.mubr.bf16.mxu1 %v4388_v1  ;;  %vm575_vm15 = vcmp.gt.f32.partialorder %v505_v41, 0.0  ;;  %v607_v17 = vmul.f32 0.01, %v505_v41  ;;  %v972_v42 = vshll.u32 %v4405_v26, 16  ;;  %v969_v43 = vrot.slane %v967_v27, 1 }
 0x1a7   : > { %v4422_v8 = vsel %vm4147_vm2, 0, %v741_v24  ;;  %v610_v31 = vmul.f32 0.01, %v520_v34  ;;  %v745_v47 = vrot.slane %v743_v30, 7  ;;  %v746_v7 = vshll.u32 %v659_v19, 16 }
 0x1a8   : > { %v639_v45 = vsel %vm575_vm15, %v505_v41, %v607_v17  ;;  %vm578_vm0 = vcmp.gt.f32.partialorder %v520_v34, 0.0  ;;  %v515_v59 = vadd.f32 %v4170_v52, %v4331_v39  ;;  %v1121_v62 = vrot.slane %v4358_v46, 1 }
 0x1a9   : > { %v660_v51 = vpack.c.bf16 %v640_v35, %v639_v45  ;;  %v1122_v60 = vrot.slane %v4371_v20, 1  ;;  %v530_v5 = vadd.f32 %v4342_v50, %v4170_v52  ;;  %v642_v4 = vsel %vm578_vm0, %v520_v34, %v610_v31 }
 0x1aa   : > { %v979_v9 = vshll.u32 %v4422_v8, 16  ;;  %vm577_vm1 = vcmp.gt.f32.partialorder %v515_v59, 0.0  ;;  %v609_v10 = vmul.f32 0.01, %v515_v59  ;;  %v748_v25 = vor.u32 %v746_v7, %v745_v47 }
 0x1ab   : > { %v970_v39 = vor.u32 %v969_v43, %v965_v13  ;;  %v974_v19 = vrot.slane %v972_v42, 1  ;;  %v4437_v24 = vsel %vm4147_vm2, %v738_v55, 0  ;;  %v750_v27 = vshrl.u32 %v660_v51, 16 }
 0x1ac   : > { %2013 = vmatmul.mubr.bf16.gmra.mrb[60].mxu0 %v4416_v40  ;;  %v641_v41 = vsel %vm577_vm1, %v515_v59, %v609_v10  ;;  %v612_v20 = vmul.f32 0.01, %v530_v5  ;;  %vm580_vm4 = vcmp.gt.f32.partialorder %v530_v5, 0.0  ;;  %v977_v50 = vshrl.u32 %v4422_v8, 16 }
 0x1ad   : > { %1852 = vmatmul.mubr.bf16.gmra.mrb[28].mxu1 %v4327_v36  ;;  %2020 = vmatprep.mubr.bf16.mxu0 %v4395_v49  ;;  %v661_v30 = vpack.c.bf16 %v642_v4, %v641_v41  ;;  %v981_v35 = vrot.slane %v979_v9, 1  ;;  %v984_v34 = vshll.u32 %v4437_v24, 16  ;;  %v525_v17 = vadd.f32 %v4170_v52, %v4344_v57 }
 0x1ae   : > { %1859 = vmatprep.mubr.bf16.mxu1 %v4413_v37  ;;  %v4444_v13 = vsel %vm855_vm3, %v970_v39, %v974_v19  ;;  %v4447_v42 = vsel %vm1096_vm8, %v1121_v62, %v1122_v60  ;;  %v753_v55 = vshll.u32 %v660_v51, 16  ;;  %v4451_v43 = vsel %vm4147_vm2, 0, %v748_v25 }
 0x1af   : > { %v752_v45 = vrot.slane %v750_v27, 7  ;;  %v644_v31 = vsel %vm580_vm4, %v530_v5, %v612_v20  ;;  %vm579_vm5 = vcmp.gt.f32.partialorder %v525_v17, 0.0  ;;  %v611_v7 = vmul.f32 0.01, %v525_v17 }
 0x1b0   : > { %v1124_v57 = vrot.slane %v4395_v49, 1  ;;  %v540_v59 = vadd.f32 %v4360_v11, %v4170_v52  ;;  %v982_v51 = vor.u32 %v981_v35, %v977_v50  ;;  %v986_v62 = vrot.slane %v984_v34, 1 }
 0x1b1   : > { %v1125_v60 = vrot.slane %v4405_v26, 1  ;;  %v643_v4 = vsel %vm579_vm5, %v525_v17, %v611_v7  ;;  %v4463_v5 = vsel %vm4147_vm2, %v745_v47, 0  ;;  %v991_v9 = vshll.u32 %v4451_v43, 16 }
 0x1b2   : > { %v662_v10 = vpack.c.bf16 %v644_v31, %v643_v4  ;;  %v614_v25 = vmul.f32 0.01, %v540_v59  ;;  %v755_v39 = vor.u32 %v753_v55, %v752_v45  ;;  %v757_v19 = vshrl.u32 %v661_v30, 16 }
 0x1b3   : > { %vm582_vm6 = vcmp.gt.f32.partialorder %v540_v59, 0.0  ;;  %v535_v11 = vadd.f32 %v4170_v52, %v4365_v14  ;;  %v4469_v27 = vsel %vm855_vm3, %v982_v51, %v986_v62  ;;  %v4472_v26 = vsel %vm1096_vm8, %v1124_v57, %v1125_v60 }
 0x1b4   : > { %2021 = vmatmul.mubr.bf16.gmra.mrb[64].mxu0 %v4447_v42  ;;  %v989_v41 = vshrl.u32 %v4451_v43, 16  ;;  %v996_v47 = vshll.u32 %v4463_v5, 16  ;;  %v993_v20 = vrot.slane %v991_v9, 1  ;;  %v646_v50 = vsel %vm582_vm6, %v540_v59, %v614_v25 }
 0x1b5   : > { %1860 = vmatmul.mubr.bf16.gmra.mrb[32].mxu1 %v4358_v46  ;;  %2028 = vmatprep.mubr.bf16.mxu0 %v4422_v8  ;;  %vm581_vm7 = vcmp.gt.f32.partialorder %v535_v11, 0.0  ;;  %v613_v35 = vmul.f32 0.01, %v535_v11  ;;  %v759_v34 = vrot.slane %v757_v19, 7  ;;  %v760_v17 = vshll.u32 %v661_v30, 16 }
 0x1b6   : > { %1867 = vmatprep.mubr.bf16.mxu1 %v4444_v13  ;;  %v4479_v14 = vsel %vm4147_vm2, 0, %v755_v39  ;;  %v1127_v55 = vrot.slane %v4422_v8, 1  ;;  %v550_v7 = vadd.f32 %v4377_v2, %v4170_v52  ;;  %v998_v57 = vrot.slane %v996_v47, 1 }
 0x1b7   : > { %v645_v31 = vsel %vm581_vm7, %v535_v11, %v613_v35  ;;  %v1128_v59 = vrot.slane %v4437_v24, 1  ;;  %v545_v51 = vadd.f32 %v4170_v52, %v4382_v44  ;;  %v994_v62 = vor.u32 %v993_v20, %v989_v41  ;;  %v2960_v20 = vpop.f32.mrb[0].mxu1 }
 0x1b8   : > { %v663_v30 = vpack.c.bf16 %v646_v50, %v645_v31  ;;  %v1003_v60 = vshll.u32 %v4479_v14, 16  ;;  %vm584_vm9 = vcmp.gt.f32.partialorder %v550_v7, 0.0  ;;  %v616_v4 = vmul.f32 0.01, %v550_v7 }
 0x1b9   : > { %v762_v9 = vor.u32 %v760_v17, %v759_v34  ;;  %v764_v25 = vshrl.u32 %v662_v10, 16  ;;  %v850_v39 = vsel %vm4147_vm2, %v752_v45, 0  ;;  %vm583_vm10 = vcmp.gt.f32.partialorder %v545_v51, 0.0 }
 0x1ba   : > { %v648_v2 = vsel %vm584_vm9, %v550_v7, %v616_v4  ;;  %v615_v19 = vmul.f32 0.01, %v545_v51  ;;  %v4494_v11 = vsel %vm1096_vm8, %v1127_v55, %v1128_v59  ;;  %v1001_v24 = vshrl.u32 %v4479_v14, 16  ;;  %v2961_v55 = vpop.f32.mrb[1].mxu1 }
 0x1bb   : > { %v4498_v52 = vsel %vm855_vm3, %v994_v62, %v998_v57  ;;  %v1005_v44 = vrot.slane %v1003_v60, 1  ;;  %v1008_v41 = vshll.u32 %v850_v39, 16  ;;  %v766_v50 = vrot.slane %v764_v25, 7  ;;  %v2963_v57 = vpop.f32.mrb[2].mxu1 }
 0x1bc   : > { %2029 = vmatmul.mubr.bf16.gmra.mrb[68].mxu0 %v4472_v26  ;;  %v647_v47 = vsel %vm583_vm10, %v545_v51, %v615_v19  ;;  %v767_v35 = vshll.u32 %v662_v10, 16  ;;  %v4503_v45 = vsel %vm4147_vm2, 0, %v762_v9  ;;  %v1130_v31 = vrot.slane %v4451_v43, 1  ;;  %v2964_v62 = vpop.f32.mrb[3].mxu1 }
 0x1bd   : > { %1868 = vmatmul.mubr.bf16.gmra.mrb[36].mxu1 %v4395_v49  ;;  %2036 = vmatprep.mubr.bf16.mxu0 %v4451_v43  ;;  %v4505_v17 = vpack.c.bf16 %v648_v2, %v647_v47  ;;  %v1131_v7 = vrot.slane %v4463_v5, 1  ;;  %v1006_v59 = vor.u32 %v1005_v44, %v1001_v24  ;;  %v1010_v10 = vrot.slane %v1008_v41, 1 }
 0x1be   : > { %1875 = vmatprep.mubr.bf16.mxu1 %v4469_v27  ;;  %v1015_v51 = vshll.u32 %v4503_v45, 16  ;;  %v769_v60 = vor.u32 %v767_v35, %v766_v50  ;;  %v771_v4 = vshrl.u32 %v663_v30, 16  ;;  %v851_v9 = vsel %vm4147_vm2, %v759_v34, 0 }
 0x1bf   : > { %v4515_v25 = vadd.f32 %v2961_v55, %v2960_v20  ;;  %v4517_v2 = vadd.f32 %v2964_v62, %v2963_v57  ;;  %v4520_v19 = vsel %vm1096_vm8, %v1130_v31, %v1131_v7  ;;  %v4523_v5 = vsel %vm855_vm3, %v1006_v59, %v1010_v10 }
 0x1c0   : > { %v1013_v24 = vshrl.u32 %v4503_v45, 16  ;;  %v1017_v44 = vrot.slane %v1015_v51, 1  ;;  %v1020_v41 = vshll.u32 %v851_v9, 16  ;;  %v773_v47 = vrot.slane %v771_v4, 7 }
 0x1c1   : > { %v774_v35 = vshll.u32 %v663_v30, 16  ;;  %v4529_v34 = vsel %vm4147_vm2, 0, %v769_v60  ;;  %v1133_v20 = vrot.slane %v4479_v14, 1  ;;  %v1134_v55 = vrot.slane %v850_v39, 1 }
 0x1c2   : > { %v1018_v31 = vor.u32 %v1017_v44, %v1013_v24  ;;  %v1022_v7 = vrot.slane %v1020_v41, 1  ;;  %v1027_v57 = vshll.u32 %v4529_v34, 16  ;;  %v852_v30 = vsel %vm4147_vm2, %v766_v50, 0 }
 0x1c3   : > { %v776_v59 = vor.u32 %v774_v35, %v773_v47  ;;  %v4539_v10 = vsel %vm1096_vm8, %v1133_v20, %v1134_v55  ;;  %v1025_v62 = vshrl.u32 %v4529_v34, 16  ;;  %v1032_v4 = vshll.u32 %v852_v30, 16 }
 0x1c4   : > { %2037 = vmatmul.mubr.bf16.gmra.mrb[72].mxu0 %v4494_v11  ;;  %v4542_v51 = vsel %vm855_vm3, %v1018_v31, %v1022_v7  ;;  %v1029_v60 = vrot.slane %v1027_v57, 1  ;;  %v778_v50 = vshrl.u32 %v4505_v17, 16  ;;  %v1136_v24 = vrot.slane %v4503_v45, 1 }
 0x1c5   : > { %1876 = vmatmul.mubr.bf16.gmra.mrb[40].mxu1 %v4422_v8  ;;  %2044 = vmatprep.mubr.bf16.mxu0 %v4479_v14  ;;  %v4548_v39 = vsel %vm4147_vm2, 0, %v776_v59  ;;  %v1137_v44 = vrot.slane %v851_v9, 1  ;;  %v1034_v35 = vrot.slane %v1032_v4, 1  ;;  %v853_v55 = vsel %vm4147_vm2, %v773_v47, 0 }
 0x1c6   : > { %1883 = vmatprep.mubr.bf16.mxu1 %v4498_v52  ;;  %v1030_v41 = vor.u32 %v1029_v60, %v1025_v62  ;;  %v1039_v20 = vshll.u32 %v4548_v39, 16  ;;  %v4558_v31 = vrot.slane %v778_v50, 7  ;;  %v781_v7 = vshll.u32 %v4505_v17, 16 }
 0x1c7   : > { %v4562_v57 = vsel %vm1096_vm8, %v1136_v24, %v1137_v44  ;;  %v1037_v22 = vshrl.u32 %v4548_v39, 16  ;;  %v1044_v62 = vshll.u32 %v853_v55, 16  ;;  %v1139_v4 = vrot.slane %v4529_v34, 1 }
 0x1c8   : > { %v4565_v59 = vsel %vm855_vm3, %v1030_v41, %v1034_v35  ;;  %v1041_v9 = vrot.slane %v1039_v20, 1  ;;  %v783_v17 = vor.u32 %v781_v7, %v4558_v31  ;;  %v1140_v50 = vrot.slane %v852_v30, 1  ;;  %v3715_v20 = vld [vmem:[#allocation7 + $0x208] sm:$0xff]   ;;  %v3717_v7 = vld [vmem:[#allocation7 + $0x218] sm:$0xff]  }
 0x1c9   : > { %v1046_v60 = vrot.slane %v1044_v62, 1  ;;  %v1143_v30 = vrot.slane %v853_v55, 1  ;;  %v3716_v55 = vld [vmem:[#allocation7 + $0x210] sm:$0xff]  }
 0x1ca   : > { %v1042_v47 = vor.u32 %v1041_v9, %v1037_v22  ;;  %v4576_v24 = vsel %vm4147_vm2, 0, %v783_v17  ;;  %v4582_v41 = vsel %vm1096_vm8, %v1139_v4, %v1140_v50  ;;  %v1142_v22 = vrot.slane %v4548_v39, 1 }
 0x1cb   : > { %v1162_v18 = vshrl.u32 %v4576_v24, 16 }
 0x1cc   : > { %2045 = vmatmul.mubr.bf16.gmra.mrb[76].mxu0 %v4520_v19  ;;  %v4579_v44 = vsel %vm855_vm3, %v1042_v47, %v1046_v60  ;;  %v4590_v35 = vsel %vm1096_vm8, %v1142_v22, %v1143_v30 }
 0x1cd   : > { %1884 = vmatmul.mubr.bf16.gmra.mrb[44].mxu1 %v4451_v43  ;;  %2052 = vmatprep.mubr.bf16.mxu0 %v4503_v45 }
 0x1ce   : > { %1891 = vmatprep.mubr.bf16.mxu1 %v4523_v5 }
 0x1d4   : > { %2053 = vmatmul.mubr.bf16.gmra.mrb[80].mxu0 %v4539_v10 }
 0x1d5   : > { %1892 = vmatmul.mubr.bf16.gmra.mrb[48].mxu1 %v4479_v14  ;;  %2060 = vmatprep.mubr.bf16.mxu0 %v4529_v34 }
 0x1d6   : > { %1899 = vmatprep.mubr.bf16.mxu1 %v4542_v51 }
 0x1dc   : > { %2061 = vmatmul.mubr.bf16.gmra.mrb[84].mxu0 %v4562_v57 }
 0x1dd   : > { %1900 = vmatmul.mubr.bf16.gmra.mrb[52].mxu1 %v4503_v45  ;;  %2068 = vmatprep.mubr.bf16.mxu0 %v4548_v39 }
 0x1de   : > { %1907 = vmatprep.mubr.bf16.mxu1 %v4565_v59 }
 0x1e4   : > { %2069 = vmatmul.mubr.bf16.gmra.mrb[88].mxu0 %v4582_v41 }
 0x1e5   : > { %1908 = vmatmul.mubr.bf16.gmra.mrb[56].mxu1 %v4529_v34  ;;  %2076 = vmatprep.mubr.bf16.mxu0 %v4576_v24 }
 0x1e6   : > { %1915 = vmatprep.mubr.bf16.mxu1 %v4579_v44 }
 0x1ec   : > { %2077 = vmatmul.mubr.bf16.gmra.mrb[92].mxu0 %v4590_v35 }
 0x1ed   : > { %1916 = vmatmul.mubr.bf16.gmra.mrb[60].mxu1 %v4548_v39  ;;  %2278 = vmatprep.mubr.bf16.mxu0 %v4230_v48 }
 0x1ee   : > { %2117 = vmatprep.mubr.bf16.mxu1 %v4201_v6  ;;  %v3720_v6 = vld [vmem:[#allocation7 + $0x230] sm:$0xff]  }
 0x1f4   : > { %2279 = vmatmul.mubr.bf16.vlgmr.msra.gmra.mrb[96].mxu0 %v4195_v56  ;;  %v3718_v56 = vld [vmem:[#allocation7 + $0x220] sm:$0xff]  }
 0x1f5   : > { %2118 = vmatmul.mubr.bf16.vlgmr.msra.gmra.mrb[64].mxu1 %v4207_v12  ;;  %2286 = vmatprep.mubr.bf16.mxu0 %v4247_v63  ;;  %v3721_v12 = vld [vmem:[#allocation7 + $0x238] sm:$0xff]  }
 0x1f6   : > { %3497 = vmatpush3.bf16.msra.mxu1 %v4183_v28  ;;  %2125 = vmatprep.mubr.bf16.mxu1 %v4235_v53  ;;  %v3719_v28 = vld [vmem:[#allocation7 + $0x228] sm:$0xff]  }
 0x1f7   : > { %3498 = vmatprep.subr.bf16.mxu1 %v3715_v20 }
 0x1fa   : > { %3499 = vmatpush3.bf16.msra.mxu1 %v3715_v20 }
 0x1fb   : > { %3500 = vmatprep.subr.bf16.mxu1 %v3716_v55 }
 0x1fc   : > { %2287 = vmatmul.mubr.bf16.gmra.mrb[100].mxu0 %v4215_v23  ;;  %v4640_v23 = vld [vmem:[%s5009_s4] ss:$0 sm:$0xff] }
 0x1fd   : > { %2126 = vmatmul.mubr.bf16.gmra.mrb[68].mxu1 %v4230_v48  ;;  %2294 = vmatprep.mubr.bf16.mxu0 %v4281_v38  ;;  %v1798_v48 = vadd.f32 %v4515_v25, %v4640_v23 }
 0x1fe   : > { %2133 = vmatprep.mubr.bf16.mxu1 %v4272_v29  ;;  %3501 = vmatpush3.bf16.msra.mxu1 %v3716_v55 }
 0x1ff   : > { %3502 = vmatprep.subr.bf16.mxu1 %v3717_v7 }
 0x202   : > { %3503 = vmatpush3.bf16.msra.mxu1 %v3717_v7 }
 0x203   : > { %3504 = vmatprep.subr.bf16.mxu1 %v3718_v56 }
 0x204   : > { %2295 = vmatmul.mubr.bf16.gmra.mrb[104].mxu0 %v4239_v54 }
 0x205   : > { %2134 = vmatmul.mubr.bf16.gmra.mrb[72].mxu1 %v4247_v63  ;;  %2302 = vmatprep.mubr.bf16.mxu0 %v4317_v16 }
 0x206   : > { %2141 = vmatprep.mubr.bf16.mxu1 %v4305_v61  ;;  %3505 = vmatpush3.bf16.msra.mxu1 %v3718_v56 }
 0x207   : > { %3506 = vmatprep.subr.bf16.mxu1 %v3719_v28 }
 0x20a   : > { %3507 = vmatpush3.bf16.msra.mxu1 %v3719_v28 }
 0x20b   : > { %3508 = vmatprep.subr.bf16.mxu1 %v3720_v6 }
 0x20c   : > { %2303 = vmatmul.mubr.bf16.gmra.mrb[108].mxu0 %v4263_v15 }
 0x20d   : > { %2142 = vmatmul.mubr.bf16.gmra.mrb[76].mxu1 %v4281_v38  ;;  %2310 = vmatprep.mubr.bf16.mxu0 %v4347_v32 }
 0x20e   : > { %2149 = vmatprep.mubr.bf16.mxu1 %v4350_v58  ;;  %3509 = vmatpush3.bf16.msra.mxu1 %v3720_v6 }
 0x20f   : > { %3510 = vmatprep.subr.bf16.mxu1 %v3721_v12 }
 0x212   : > { %3511 = vmatpush3.bf16.msra.mxu1 %v3721_v12 }
 0x214   : > { %2311 = vmatmul.mubr.bf16.gmra.mrb[112].mxu0 %v4299_v0 }
 0x215   : > { %2150 = vmatmul.mubr.bf16.gmra.mrb[80].mxu1 %v4317_v16  ;;  %2318 = vmatprep.mubr.bf16.mxu0 %v4388_v1  ;;  %v1801_v16 = vadd.f32 %v4517_v2, %v4640_v23 }
 0x216   : > { %2157 = vmatprep.mubr.bf16.mxu1 %v4391_v3 }
 0x21c   : > { %2319 = vmatmul.mubr.bf16.gmra.mrb[116].mxu0 %v4327_v36 }
 0x21d   : > { %2158 = vmatmul.mubr.bf16.gmra.mrb[84].mxu1 %v4347_v32  ;;  %2326 = vmatprep.mubr.bf16.mxu0 %v4413_v37 }
 0x21e   : > { %2165 = vmatprep.mubr.bf16.mxu1 %v4416_v40 }
 0x224   : > { %2327 = vmatmul.mubr.bf16.gmra.mrb[120].mxu0 %v4358_v46 }
 0x225   : > { %2166 = vmatmul.mubr.bf16.gmra.mrb[88].mxu1 %v4388_v1  ;;  %2334 = vmatprep.mubr.bf16.mxu0 %v4444_v13 }
 0x226   : > { %2173 = vmatprep.mubr.bf16.mxu1 %v4447_v42 }
 0x22c   : > { %2335 = vmatmul.mubr.bf16.gmra.mrb[124].mxu0 %v4395_v49 }
 0x22d   : > { %2174 = vmatmul.mubr.bf16.gmra.mrb[92].mxu1 %v4413_v37  ;;  %2342 = vmatprep.mubr.bf16.mxu0 %v4469_v27 }
 0x22e   : > { %2181 = vmatprep.mubr.bf16.mxu1 %v4472_v26 }
 0x234   : > { %2343 = vmatmul.mubr.bf16.gmra.mrb[128].mxu0 %v4422_v8  ;;  %v4661_v8 = vsel %vm4147_vm2, %v4558_v31, 0 }
 0x235   : > { %2182 = vmatmul.mubr.bf16.gmra.mrb[96].mxu1 %v4444_v13  ;;  %2350 = vmatprep.mubr.bf16.mxu0 %v4498_v52  ;;  %v1164_v13 = vshll.u32 %v4576_v24, 16  ;;  %v1169_v9 = vshll.u32 %v4661_v8, 16 }
 0x236   : > { %2189 = vmatprep.mubr.bf16.mxu1 %v4494_v11 }
 0x237   : > { %v1166_v31 = vrot.slane %v1164_v13, 1 }
 0x239   : > { %v1167_v20 = vor.u32 %v1166_v31, %v1162_v18 }
 0x23c   : > { %2351 = vmatmul.mubr.bf16.gmra.mrb[132].mxu0 %v4451_v43 }
 0x23d   : > { %2190 = vmatmul.mubr.bf16.gmra.mrb[100].mxu1 %v4469_v27  ;;  %2358 = vmatprep.mubr.bf16.mxu0 %v4523_v5 }
 0x23e   : > { %2197 = vmatprep.mubr.bf16.mxu1 %v4520_v19 }
 0x244   : > { %2359 = vmatmul.mubr.bf16.gmra.mrb[136].mxu0 %v4479_v14 }
 0x245   : > { %2198 = vmatmul.mubr.bf16.gmra.mrb[104].mxu1 %v4498_v52  ;;  %2366 = vmatprep.mubr.bf16.mxu0 %v4542_v51 }
 0x246   : > { %2205 = vmatprep.mubr.bf16.mxu1 %v4539_v10 }
 0x247   : > { %v3072_v54 = vpop.f32.mrb[32].mxu0 }
 0x248   : > { %v3073_v63 = vpop.f32.mrb[33].mxu0 }
 0x249   : > { %v3074_v15 = vadd.f32 %v3073_v63, %v3072_v54  ;;  %v3075_v38 = vpop.f32.mrb[34].mxu0 }
 0x24a   : > { %v3076_v0 = vpop.f32.mrb[35].mxu0 }
 0x24b   : > { %v4650_v36 = vadd.f32 %v3074_v15, %v1798_v48  ;;  %v3077_v32 = vadd.f32 %v3076_v0, %v3075_v38 }
 0x24c   : > { %2367 = vmatmul.mubr.bf16.gmra.mrb[140].mxu0 %v4503_v45 }
 0x24d   : > { %v4653_v46 = vadd.f32 %v3077_v32, %v1801_v16  ;;  %2206 = vmatmul.mubr.bf16.gmra.mrb[108].mxu1 %v4523_v5  ;;  %2374 = vmatprep.mubr.bf16.mxu0 %v4565_v59 }
 0x24e   : > { %2213 = vmatprep.mubr.bf16.mxu1 %v4562_v57 }
 0x24f   : > { %v3078_v1 = vpop.f32.mrb[36].mxu0 }
 0x250   : > { %v2966_v49 = vpop.f32.mrb[4].mxu1  ;;  %v3079_v37 = vpop.f32.mrb[37].mxu0 }
 0x251   : > { %v2967_v43 = vpop.f32.mrb[5].mxu1  ;;  %v3080_v27 = vadd.f32 %v3079_v37, %v3078_v1  ;;  %v3081_v14 = vpop.f32.mrb[38].mxu0 }
 0x252   : > { %v2968_v52 = vadd.f32 %v2967_v43, %v2966_v49  ;;  %v2969_v45 = vpop.f32.mrb[6].mxu1  ;;  %v3082_v25 = vpop.f32.mrb[39].mxu0 }
 0x253   : > { %v2970_v2 = vpop.f32.mrb[7].mxu1  ;;  %v3083_v5 = vadd.f32 %v3082_v25, %v3081_v14 }
 0x254   : > { %v1806_v62 = vadd.f32 %v2968_v52, %v4640_v23  ;;  %v2971_v17 = vadd.f32 %v2970_v2, %v2969_v45  ;;  %2375 = vmatmul.mubr.bf16.gmra.mrb[144].mxu0 %v4529_v34  ;;  %v1171_v34 = vrot.slane %v1169_v9, 1 }
 0x255   : > { %2214 = vmatmul.mubr.bf16.gmra.mrb[112].mxu1 %v4542_v51  ;;  %2382 = vmatprep.mubr.bf16.mxu0 %v4579_v44 }
 0x256   : > { %v4670_v47 = vadd.f32 %v3080_v27, %v1806_v62  ;;  %v1809_v60 = vadd.f32 %v2971_v17, %v4640_v23  ;;  %2221 = vmatprep.mubr.bf16.mxu1 %v4582_v41  ;;  %v1172_v15 = vsel %vm855_vm3, %v1167_v20, %v1171_v34  ;;  %v1177_v27 = vrot.slane %v4661_v8, 1 }
 0x257   : > { %v3084_v4 = vpop.f32.mrb[40].mxu0 }
 0x258   : > { %v4674_v50 = vadd.f32 %v3083_v5, %v1809_v60  ;;  %v2972_v22 = vpop.f32.mrb[8].mxu1  ;;  %v3085_v30 = vpop.f32.mrb[41].mxu0 }
 0x259   : > { %v2973_v55 = vpop.f32.mrb[9].mxu1  ;;  %v3086_v7 = vadd.f32 %v3085_v30, %v3084_v4  ;;  %v3087_v56 = vpop.f32.mrb[42].mxu0 }
 0x25a   : > { %v2974_v28 = vadd.f32 %v2973_v55, %v2972_v22  ;;  %v2975_v51 = vpop.f32.mrb[10].mxu1  ;;  %v3088_v6 = vpop.f32.mrb[43].mxu0 }
 0x25b   : > { %v2976_v12 = vpop.f32.mrb[11].mxu1  ;;  %v3089_v48 = vadd.f32 %v3088_v6, %v3087_v56 }
 0x25c   : > { %v1814_v54 = vadd.f32 %v2974_v28, %v4640_v23  ;;  %v2977_v63 = vadd.f32 %v2976_v12, %v2975_v51  ;;  %2383 = vmatmul.mubr.bf16.gmra.mrb[148].mxu0 %v4548_v39  ;;  %v1176_v39 = vrot.slane %v4576_v24, 1 }
 0x25d   : > { %2222 = vmatmul.mubr.bf16.gmra.mrb[116].mxu1 %v4565_v59  ;;  %2390 = vmatprep.mubr.bf16.mxu0 %v1172_v15 }
 0x25e   : > { %v4680_v38 = vadd.f32 %v3086_v7, %v1814_v54  ;;  %v1817_v0 = vadd.f32 %v2977_v63, %v4640_v23  ;;  %2229 = vmatprep.mubr.bf16.mxu1 %v4590_v35  ;;  %v4692_v9 = vsel %vm1096_vm8, %v1176_v39, %v1177_v27 }
 0x25f   : > { %v3090_v16 = vpop.f32.mrb[44].mxu0 }
 0x260   : > { %v4684_v32 = vadd.f32 %v3089_v48, %v1817_v0  ;;  %v2978_v1 = vpop.f32.mrb[12].mxu1  ;;  %v3091_v49 = vpop.f32.mrb[45].mxu0 }
 0x261   : > { %v2979_v37 = vpop.f32.mrb[13].mxu1  ;;  %v3092_v13 = vadd.f32 %v3091_v49, %v3090_v16  ;;  %v3093_v43 = vpop.f32.mrb[46].mxu0 }
 0x262   : > { %v2980_v59 = vadd.f32 %v2979_v37, %v2978_v1  ;;  %v2981_v14 = vpop.f32.mrb[14].mxu1  ;;  %v3094_v52 = vpop.f32.mrb[47].mxu0 }
 0x263   : > { %v2982_v45 = vpop.f32.mrb[15].mxu1  ;;  %v3095_v25 = vadd.f32 %v3094_v52, %v3093_v43 }
 0x264   : > { %v1822_v2 = vadd.f32 %v2980_v59, %v4640_v23  ;;  %v2983_v5 = vadd.f32 %v2982_v45, %v2981_v14  ;;  %2391 = vmatmul.mubr.bf16.gmra.mrb[152].mxu0 %v4576_v24 }
 0x265   : > { %2230 = vmatmul.mubr.bf16.gmra.mrb[120].mxu1 %v4579_v44  ;;  %2398 = vmatprep.mubr.bf16.mxu0 %v4163_v33 }
 0x266   : > { %v4695_v62 = vadd.f32 %v3092_v13, %v1822_v2  ;;  %v1825_v8 = vadd.f32 %v2983_v5, %v4640_v23  ;;  %2237 = vmatprep.mubr.bf16.mxu1 %v4692_v9 }
 0x267   : > { %v3096_v17 = vpop.f32.mrb[48].mxu0 }
 0x268   : > { %v4699_v18 = vadd.f32 %v3095_v25, %v1825_v8  ;;  %v2984_v31 = vpop.f32.mrb[16].mxu1  ;;  %v3097_v60 = vpop.f32.mrb[49].mxu0 }
 0x269   : > { %v2985_v4 = vpop.f32.mrb[17].mxu1  ;;  %v3098_v24 = vadd.f32 %v3097_v60, %v3096_v17  ;;  %v3099_v22 = vpop.f32.mrb[50].mxu0 }
 0x26a   : > { %v2986_v44 = vadd.f32 %v2985_v4, %v2984_v31  ;;  %v2987_v30 = vpop.f32.mrb[18].mxu1  ;;  %v3100_v20 = vpop.f32.mrb[51].mxu0 }
 0x26b   : > { %v2988_v34 = vpop.f32.mrb[19].mxu1  ;;  %v3101_v55 = vadd.f32 %v3100_v20, %v3099_v22 }
 0x26c   : > { %v1830_v33 = vadd.f32 %v2986_v44, %v4640_v23  ;;  %v2989_v7 = vadd.f32 %v2988_v34, %v2987_v30  ;;  %2399 = vmatmul.mubr.bf16.gmra.mrb[156].mxu0 %v4153_v21 }
 0x26d   : > { %2238 = vmatmul.mubr.bf16.gmra.mrb[124].mxu1 %v1172_v15 }
 0x26e   : > { %v4703_v56 = vadd.f32 %v3098_v24, %v1830_v33  ;;  %v1833_v28 = vadd.f32 %v2989_v7, %v4640_v23  ;;  %3512 = vmatprep.mubr.bf16.mxu1 %v4235_v53 }
 0x26f   : > { %v3102_v51 = vpop.f32.mrb[52].mxu0 }
 0x270   : > { %v4707_v6 = vadd.f32 %v3101_v55, %v1833_v28  ;;  %v2990_v12 = vpop.f32.mrb[20].mxu1  ;;  %v3103_v48 = vpop.f32.mrb[53].mxu0 }
 0x271   : > { %v2991_v54 = vpop.f32.mrb[21].mxu1  ;;  %v3104_v63 = vadd.f32 %v3103_v48, %v3102_v51  ;;  %v3105_v0 = vpop.f32.mrb[54].mxu0 }
 0x272   : > { %v2992_v16 = vadd.f32 %v2991_v54, %v2990_v12  ;;  %v2993_v1 = vpop.f32.mrb[22].mxu1  ;;  %v3106_v49 = vpop.f32.mrb[55].mxu0 }
 0x273   : > { %v2994_v37 = vpop.f32.mrb[23].mxu1  ;;  %v3107_v21 = vadd.f32 %v3106_v49, %v3105_v0 }
 0x274   : > { %v1838_v15 = vadd.f32 %v2992_v16, %v4640_v23  ;;  %v2995_v13 = vadd.f32 %v2994_v37, %v2993_v1 }
 0x275   : > { %3513 = vmatmul.mubr.bf16.vlgmr.msra.gmra.mrb[128].mxu1 %v4272_v29 }
 0x276   : > { %v4711_v43 = vadd.f32 %v3104_v63, %v1838_v15  ;;  %v1841_v53 = vadd.f32 %v2995_v13, %v4640_v23  ;;  %3516 = vmatprep.mubr.bf16.mxu1 %v4305_v61 }
 0x277   : > { %v3108_v39 = vpop.f32.mrb[56].mxu0 }
 0x278   : > { %v4715_v27 = vadd.f32 %v3107_v21, %v1841_v53  ;;  %v2996_v59 = vpop.f32.mrb[24].mxu1  ;;  %v3109_v14 = vpop.f32.mrb[57].mxu0 }
 0x279   : > { %v2997_v52 = vpop.f32.mrb[25].mxu1  ;;  %v3110_v45 = vadd.f32 %v3109_v14, %v3108_v39  ;;  %v3111_v25 = vpop.f32.mrb[58].mxu0 }
 0x27a   : > { %v2998_v2 = vadd.f32 %v2997_v52, %v2996_v59  ;;  %v2999_v5 = vpop.f32.mrb[26].mxu1  ;;  %v3112_v8 = vpop.f32.mrb[59].mxu0 }
 0x27b   : > { %v3000_v17 = vpop.f32.mrb[27].mxu1  ;;  %v3113_v31 = vadd.f32 %v3112_v8, %v3111_v25 }
 0x27c   : > { %v1846_v29 = vadd.f32 %v2998_v2, %v4640_v23  ;;  %v3001_v60 = vadd.f32 %v3000_v17, %v2999_v5 }
 0x27d   : > { %3517 = vmatmul.mubr.bf16.gmra.mrb[132].mxu1 %v4350_v58 }
 0x27e   : > { %v4719_v4 = vadd.f32 %v3110_v45, %v1846_v29  ;;  %v1849_v61 = vadd.f32 %v3001_v60, %v4640_v23  ;;  %3520 = vmatprep.mubr.bf16.mxu1 %v4391_v3 }
 0x27f   : > { %v3114_v24 = vpop.f32.mrb[60].mxu0 }
 0x280   : > { %v4723_v22 = vadd.f32 %v3113_v31, %v1849_v61  ;;  %v3002_v44 = vpop.f32.mrb[28].mxu1  ;;  %v3115_v30 = vpop.f32.mrb[61].mxu0 }
 0x281   : > { %v3003_v20 = vpop.f32.mrb[29].mxu1  ;;  %v3116_v34 = vadd.f32 %v3115_v30, %v3114_v24  ;;  %v3117_v55 = vpop.f32.mrb[62].mxu0 }
 0x282   : > { %v3004_v33 = vadd.f32 %v3003_v20, %v3002_v44  ;;  %v3005_v7 = vpop.f32.mrb[30].mxu1  ;;  %v3118_v28 = vpop.f32.mrb[63].mxu0 }
 0x283   : > { %v3006_v51 = vpop.f32.mrb[31].mxu1  ;;  %v3119_v12 = vadd.f32 %v3118_v28, %v3117_v55 }
 0x284   : > { %v1854_v58 = vadd.f32 %v3004_v33, %v4640_v23  ;;  %v3007_v48 = vadd.f32 %v3006_v51, %v3005_v7 }
 0x285   : > { %3521 = vmatmul.mubr.bf16.gmra.mrb[136].mxu1 %v4416_v40 }
 0x286   : > { %v4727_v54 = vadd.f32 %v3116_v34, %v1854_v58  ;;  %v1857_v3 = vadd.f32 %v3007_v48, %v4640_v23  ;;  %3524 = vmatprep.mubr.bf16.mxu1 %v4447_v42 }
 0x287   : > { %v3120_v63 = vpop.f32.mrb[64].mxu0 }
 0x288   : > { %v4731_v0 = vadd.f32 %v3119_v12, %v1857_v3  ;;  %v3008_v16 = vpop.f32.mrb[32].mxu1  ;;  %v3121_v1 = vpop.f32.mrb[65].mxu0 }
 0x289   : > { %v3009_v49 = vpop.f32.mrb[33].mxu1  ;;  %v3122_v37 = vadd.f32 %v3121_v1, %v3120_v63  ;;  %v3123_v21 = vpop.f32.mrb[66].mxu0 }
 0x28a   : > { %v3010_v15 = vadd.f32 %v3009_v49, %v3008_v16  ;;  %v3011_v13 = vpop.f32.mrb[34].mxu1  ;;  %v3124_v53 = vpop.f32.mrb[67].mxu0 }
 0x28b   : > { %v3012_v39 = vpop.f32.mrb[35].mxu1  ;;  %v3125_v59 = vadd.f32 %v3124_v53, %v3123_v21 }
 0x28c   : > { %v1862_v40 = vadd.f32 %v3010_v15, %v4640_v23  ;;  %v3013_v14 = vadd.f32 %v3012_v39, %v3011_v13 }
 0x28d   : > { %3525 = vmatmul.mubr.bf16.gmra.mrb[140].mxu1 %v4472_v26 }
 0x28e   : > { %v4735_v52 = vadd.f32 %v3122_v37, %v1862_v40  ;;  %v1865_v42 = vadd.f32 %v3013_v14, %v4640_v23  ;;  %3528 = vmatprep.mubr.bf16.mxu1 %v4494_v11 }
 0x28f   : > { %v3126_v45 = vpop.f32.mrb[68].mxu0 }
 0x290   : > { %v4739_v25 = vadd.f32 %v3125_v59, %v1865_v42  ;;  %v3014_v2 = vpop.f32.mrb[36].mxu1  ;;  %v3127_v5 = vpop.f32.mrb[69].mxu0 }
 0x291   : > { %v3015_v8 = vpop.f32.mrb[37].mxu1  ;;  %v3128_v17 = vadd.f32 %v3127_v5, %v3126_v45  ;;  %v3129_v31 = vpop.f32.mrb[70].mxu0 }
 0x292   : > { %v3016_v29 = vadd.f32 %v3015_v8, %v3014_v2  ;;  %v3017_v60 = vpop.f32.mrb[38].mxu1  ;;  %v3130_v61 = vpop.f32.mrb[71].mxu0 }
 0x293   : > { %v3018_v24 = vpop.f32.mrb[39].mxu1  ;;  %v3131_v44 = vadd.f32 %v3130_v61, %v3129_v31 }
 0x294   : > { %v1870_v26 = vadd.f32 %v3016_v29, %v4640_v23  ;;  %v3019_v30 = vadd.f32 %v3018_v24, %v3017_v60 }
 0x295   : > { %3529 = vmatmul.mubr.bf16.gmra.mrb[144].mxu1 %v4520_v19 }
 0x296   : > { %v4743_v20 = vadd.f32 %v3128_v17, %v1870_v26  ;;  %v1873_v11 = vadd.f32 %v3019_v30, %v4640_v23  ;;  %3532 = vmatprep.mubr.bf16.mxu1 %v4539_v10 }
 0x297   : > { %v3132_v34 = vpop.f32.mrb[72].mxu0 }
 0x298   : > { %v4747_v55 = vadd.f32 %v3131_v44, %v1873_v11  ;;  %v3020_v33 = vpop.f32.mrb[40].mxu1  ;;  %v3133_v7 = vpop.f32.mrb[73].mxu0 }
 0x299   : > { %v3021_v28 = vpop.f32.mrb[41].mxu1  ;;  %v3134_v51 = vadd.f32 %v3133_v7, %v3132_v34  ;;  %v3135_v12 = vpop.f32.mrb[74].mxu0 }
 0x29a   : > { %v3022_v58 = vadd.f32 %v3021_v28, %v3020_v33  ;;  %v3023_v48 = vpop.f32.mrb[42].mxu1  ;;  %v3136_v3 = vpop.f32.mrb[75].mxu0  ;;  %v5028_v28 = vld [vmem:[#allocation12_spill] sm:$0xff] }
 0x29b   : > { %v3024_v63 = vpop.f32.mrb[43].mxu1  ;;  %v3137_v16 = vadd.f32 %v3136_v3, %v3135_v12 }
 0x29c   : > { %v1878_v19 = vadd.f32 %v3022_v58, %v4640_v23  ;;  %v3025_v1 = vadd.f32 %v3024_v63, %v3023_v48 }
 0x29d   : > { %3533 = vmatmul.mubr.bf16.gmra.mrb[148].mxu1 %v4562_v57 }
 0x29e   : > { %v4751_v49 = vadd.f32 %v3134_v51, %v1878_v19  ;;  %v1881_v10 = vadd.f32 %v3025_v1, %v4640_v23  ;;  %3536 = vmatprep.mubr.bf16.mxu1 %v4582_v41 }
 0x29f   : > { %v3138_v37 = vpop.f32.mrb[76].mxu0 }
 0x2a0   : > { %v4755_v21 = vadd.f32 %v3137_v16, %v1881_v10  ;;  %v3026_v15 = vpop.f32.mrb[44].mxu1  ;;  %v3139_v13 = vpop.f32.mrb[77].mxu0 }
 0x2a1   : > { %v3027_v53 = vpop.f32.mrb[45].mxu1  ;;  %v3140_v39 = vadd.f32 %v3139_v13, %v3138_v37  ;;  %v3141_v59 = vpop.f32.mrb[78].mxu0 }
 0x2a2   : > { %v3028_v40 = vadd.f32 %v3027_v53, %v3026_v15  ;;  %v3029_v14 = vpop.f32.mrb[46].mxu1  ;;  %v3142_v42 = vpop.f32.mrb[79].mxu0 }
 0x2a3   : > { %v3030_v45 = vpop.f32.mrb[47].mxu1  ;;  %v3143_v2 = vadd.f32 %v3142_v42, %v3141_v59 }
 0x2a4   : > { %v1886_v57 = vadd.f32 %v3028_v40, %v4640_v23  ;;  %v3031_v5 = vadd.f32 %v3030_v45, %v3029_v14 }
 0x2a5   : > { %3537 = vmatmul.mubr.bf16.gmra.mrb[152].mxu1 %v4590_v35 }
 0x2a6   : > { %v4759_v8 = vadd.f32 %v3140_v39, %v1886_v57  ;;  %v1889_v41 = vadd.f32 %v3031_v5, %v4640_v23  ;;  %3540 = vmatprep.mubr.bf16.mxu1 %v4692_v9 }
 0x2a7   : > { %v3144_v17 = vpop.f32.mrb[80].mxu0 }
 0x2a8   : > { %v4763_v31 = vadd.f32 %v3143_v2, %v1889_v41  ;;  %v3032_v29 = vpop.f32.mrb[48].mxu1  ;;  %v3145_v60 = vpop.f32.mrb[81].mxu0 }
 0x2a9   : > { %v3033_v61 = vpop.f32.mrb[49].mxu1  ;;  %v3146_v24 = vadd.f32 %v3145_v60, %v3144_v17  ;;  %v3147_v44 = vpop.f32.mrb[82].mxu0 }
 0x2aa   : > { %v3034_v26 = vadd.f32 %v3033_v61, %v3032_v29  ;;  %v3035_v30 = vpop.f32.mrb[50].mxu1  ;;  %v3148_v11 = vpop.f32.mrb[83].mxu0 }
 0x2ab   : > { %v3036_v34 = vpop.f32.mrb[51].mxu1  ;;  %v3149_v33 = vadd.f32 %v3148_v11, %v3147_v44 }
 0x2ac   : > { %v1894_v35 = vadd.f32 %v3034_v26, %v4640_v23  ;;  %v3037_v7 = vadd.f32 %v3036_v34, %v3035_v30 }
 0x2ad   : > { %3541 = vmatmul.mubr.bf16.gmra.mrb[156].mxu1 %v5028_v28 }
 0x2ae   : > { %v4767_v51 = vadd.f32 %v3146_v24, %v1894_v35  ;;  %v1897_v9 = vadd.f32 %v3037_v7, %v4640_v23 }
 0x2af   : > { %v3150_v12 = vpop.f32.mrb[84].mxu0 }
 0x2b0   : > { %v4770_v58 = vadd.f32 %v3149_v33, %v1897_v9  ;;  %v3038_v48 = vpop.f32.mrb[52].mxu1  ;;  %v3151_v3 = vpop.f32.mrb[85].mxu0 }
 0x2b1   : > { %v3039_v63 = vpop.f32.mrb[53].mxu1  ;;  %v3152_v16 = vadd.f32 %v3151_v3, %v3150_v12  ;;  %v3153_v19 = vpop.f32.mrb[86].mxu0 }
 0x2b2   : > { %v3040_v1 = vadd.f32 %v3039_v63, %v3038_v48  ;;  %v3041_v10 = vpop.f32.mrb[54].mxu1  ;;  %v3154_v37 = vpop.f32.mrb[87].mxu0 }
 0x2b3   : > { %v3042_v15 = vpop.f32.mrb[55].mxu1  ;;  %v3155_v13 = vadd.f32 %v3154_v37, %v3153_v19 }
 0x2b4   : > { %v1902_v53 = vadd.f32 %v3040_v1, %v4640_v23  ;;  %v3043_v39 = vadd.f32 %v3042_v15, %v3041_v10 }
 0x2b6   : > { %v4773_v59 = vadd.f32 %v3152_v16, %v1902_v53  ;;  %v1905_v40 = vadd.f32 %v3043_v39, %v4640_v23 }
 0x2b7   : > { %v3156_v14 = vpop.f32.mrb[88].mxu0 }
 0x2b8   : > { %v4776_v42 = vadd.f32 %v3155_v13, %v1905_v40  ;;  %v3044_v45 = vpop.f32.mrb[56].mxu1  ;;  %v3157_v2 = vpop.f32.mrb[89].mxu0 }
 0x2b9   : > { %v3045_v57 = vpop.f32.mrb[57].mxu1  ;;  %v3158_v5 = vadd.f32 %v3157_v2, %v3156_v14  ;;  %v3159_v41 = vpop.f32.mrb[90].mxu0 }
 0x2ba   : > { %v3046_v17 = vadd.f32 %v3045_v57, %v3044_v45  ;;  %v3047_v29 = vpop.f32.mrb[58].mxu1  ;;  %v3160_v60 = vpop.f32.mrb[91].mxu0 }
 0x2bb   : > { %v3048_v61 = vpop.f32.mrb[59].mxu1  ;;  %v3161_v24 = vadd.f32 %v3160_v60, %v3159_v41 }
 0x2bc   : > { %v1910_v44 = vadd.f32 %v3046_v17, %v4640_v23  ;;  %v3049_v26 = vadd.f32 %v3048_v61, %v3047_v29 }
 0x2be   : > { %v4779_v30 = vadd.f32 %v3158_v5, %v1910_v44  ;;  %v1913_v11 = vadd.f32 %v3049_v26, %v4640_v23 }
 0x2bf   : > { %v3162_v34 = vpop.f32.mrb[92].mxu0 }
 0x2c0   : > { %v4782_v33 = vadd.f32 %v3161_v24, %v1913_v11  ;;  %v3050_v35 = vpop.f32.mrb[60].mxu1  ;;  %v3163_v7 = vpop.f32.mrb[93].mxu0 }
 0x2c1   : > { %v3051_v28 = vpop.f32.mrb[61].mxu1  ;;  %v3164_v9 = vadd.f32 %v3163_v7, %v3162_v34  ;;  %v3165_v12 = vpop.f32.mrb[94].mxu0 }
 0x2c2   : > { %v3052_v48 = vadd.f32 %v3051_v28, %v3050_v35  ;;  %v3053_v3 = vpop.f32.mrb[62].mxu1  ;;  %v3166_v63 = vpop.f32.mrb[95].mxu0 }
 0x2c3   : > { %v3054_v16 = vpop.f32.mrb[63].mxu1  ;;  %v3167_v19 = vadd.f32 %v3166_v63, %v3165_v12 }
 0x2c4   : > { %v1918_v1 = vadd.f32 %v3052_v48, %v4640_v23  ;;  %v3055_v10 = vadd.f32 %v3054_v16, %v3053_v3 }
 0x2c6   : > { %v4785_v37 = vadd.f32 %v3164_v9, %v1918_v1  ;;  %v1921_v15 = vadd.f32 %v3055_v10, %v4640_v23 }
 0x2c7   : > { %v3296_v13 = vpop.f32.mrb[96].mxu0 }
 0x2c8   : > { %v4788_v53 = vadd.f32 %v3167_v19, %v1921_v15  ;;  %v3184_v39 = vpop.f32.mrb[64].mxu1  ;;  %v3297_v40 = vpop.f32.mrb[97].mxu0 }
 0x2c9   : > { %v3185_v14 = vpop.f32.mrb[65].mxu1  ;;  %v3298_v45 = vadd.f32 %v3297_v40, %v3296_v13  ;;  %v3299_v2 = vpop.f32.mrb[98].mxu0 }
 0x2ca   : > { %v3186_v57 = vadd.f32 %v3185_v14, %v3184_v39  ;;  %v3187_v5 = vpop.f32.mrb[66].mxu1  ;;  %v3300_v41 = vpop.f32.mrb[99].mxu0 }
 0x2cb   : > { %v3188_v17 = vpop.f32.mrb[67].mxu1  ;;  %v3301_v29 = vadd.f32 %v3300_v41, %v3299_v2 }
 0x2cc   : > { %v2120_v60 = vadd.f32 %v3186_v57, %v4650_v36  ;;  %v3189_v61 = vadd.f32 %v3188_v17, %v3187_v5 }
 0x2ce   : > { %v2123_v24 = vadd.f32 %v3189_v61, %v4653_v46  ;;  %v4792_v44 = vadd.f32 %v3298_v45, %v2120_v60 }
 0x2cf   : > { %v3302_v23 = vpop.f32.mrb[100].mxu0 }
 0x2d0   : > { %v3190_v26 = vpop.f32.mrb[68].mxu1  ;;  %v3303_v11 = vpop.f32.mrb[101].mxu0  ;;  %v4794_v34 = vadd.f32 %v3301_v29, %v2123_v24 }
 0x2d1   : > { %v3191_v35 = vpop.f32.mrb[69].mxu1  ;;  %v3304_v7 = vadd.f32 %v3303_v11, %v3302_v23  ;;  %v3305_v28 = vpop.f32.mrb[102].mxu0 }
 0x2d2   : > { %v3192_v9 = vadd.f32 %v3191_v35, %v3190_v26  ;;  %v3193_v12 = vpop.f32.mrb[70].mxu1  ;;  %v3306_v48 = vpop.f32.mrb[103].mxu0 }
 0x2d3   : > { %v3194_v3 = vpop.f32.mrb[71].mxu1  ;;  %v3307_v63 = vadd.f32 %v3306_v48, %v3305_v28 }
 0x2d4   : > { %v2128_v36 = vadd.f32 %v3192_v9, %v4670_v47  ;;  %v3195_v16 = vadd.f32 %v3194_v3, %v3193_v12 }
 0x2d6   : > { %v2131_v46 = vadd.f32 %v3195_v16, %v4674_v50  ;;  %v4798_v19 = vadd.f32 %v3304_v7, %v2128_v36 }
 0x2d7   : > { %v3308_v1 = vpop.f32.mrb[104].mxu0 }
 0x2d8   : > { %v3196_v10 = vpop.f32.mrb[72].mxu1  ;;  %v3309_v15 = vpop.f32.mrb[105].mxu0  ;;  %v4800_v13 = vadd.f32 %v3307_v63, %v2131_v46 }
 0x2d9   : > { %v3197_v39 = vpop.f32.mrb[73].mxu1  ;;  %v3310_v40 = vadd.f32 %v3309_v15, %v3308_v1  ;;  %v3311_v14 = vpop.f32.mrb[106].mxu0 }
 0x2da   : > { %v3198_v45 = vadd.f32 %v3197_v39, %v3196_v10  ;;  %v3199_v2 = vpop.f32.mrb[74].mxu1  ;;  %v3312_v57 = vpop.f32.mrb[107].mxu0 }
 0x2db   : > { %v3200_v5 = vpop.f32.mrb[75].mxu1  ;;  %v3313_v41 = vadd.f32 %v3312_v57, %v3311_v14 }
 0x2dc   : > { %v2136_v47 = vadd.f32 %v3198_v45, %v4680_v38  ;;  %v3201_v17 = vadd.f32 %v3200_v5, %v3199_v2 }
 0x2de   : > { %v2139_v50 = vadd.f32 %v3201_v17, %v4684_v32  ;;  %v4804_v29 = vadd.f32 %v3310_v40, %v2136_v47 }
 0x2df   : > { %v3314_v60 = vpop.f32.mrb[108].mxu0 }
 0x2e0   : > { %v3202_v61 = vpop.f32.mrb[76].mxu1  ;;  %v3315_v24 = vpop.f32.mrb[109].mxu0  ;;  %v4806_v23 = vadd.f32 %v3313_v41, %v2139_v50 }
 0x2e1   : > { %v3203_v26 = vpop.f32.mrb[77].mxu1  ;;  %v3316_v11 = vadd.f32 %v3315_v24, %v3314_v60  ;;  %v3317_v35 = vpop.f32.mrb[110].mxu0 }
 0x2e2   : > { %v3204_v7 = vadd.f32 %v3203_v26, %v3202_v61  ;;  %v3205_v28 = vpop.f32.mrb[78].mxu1  ;;  %v3318_v9 = vpop.f32.mrb[111].mxu0 }
 0x2e3   : > { %v3206_v12 = vpop.f32.mrb[79].mxu1  ;;  %v3319_v48 = vadd.f32 %v3318_v9, %v3317_v35 }
 0x2e4   : > { %v2144_v38 = vadd.f32 %v3204_v7, %v4695_v62  ;;  %v3207_v3 = vadd.f32 %v3206_v12, %v3205_v28 }
 0x2e6   : > { %v2147_v32 = vadd.f32 %v3207_v3, %v4699_v18  ;;  %v4810_v63 = vadd.f32 %v3316_v11, %v2144_v38 }
 0x2e7   : > { %v3320_v36 = vpop.f32.mrb[112].mxu0 }
 0x2e8   : > { %v3208_v16 = vpop.f32.mrb[80].mxu1  ;;  %v3321_v46 = vpop.f32.mrb[113].mxu0  ;;  %v4812_v1 = vadd.f32 %v3319_v48, %v2147_v32 }
 0x2e9   : > { %v3209_v10 = vpop.f32.mrb[81].mxu1  ;;  %v3322_v15 = vadd.f32 %v3321_v46, %v3320_v36  ;;  %v3323_v39 = vpop.f32.mrb[114].mxu0 }
 0x2ea   : > { %v3210_v40 = vadd.f32 %v3209_v10, %v3208_v16  ;;  %v3211_v14 = vpop.f32.mrb[82].mxu1  ;;  %v3324_v45 = vpop.f32.mrb[115].mxu0 }
 0x2eb   : > { %v3212_v2 = vpop.f32.mrb[83].mxu1  ;;  %v3325_v57 = vadd.f32 %v3324_v45, %v3323_v39 }
 0x2ec   : > { %v2152_v62 = vadd.f32 %v3210_v40, %v4703_v56  ;;  %v3213_v5 = vadd.f32 %v3212_v2, %v3211_v14 }
 0x2ee   : > { %v2155_v18 = vadd.f32 %v3213_v5, %v4707_v6  ;;  %v4816_v41 = vadd.f32 %v3322_v15, %v2152_v62 }
 0x2ef   : > { %v3326_v47 = vpop.f32.mrb[116].mxu0 }
 0x2f0   : > { %v3214_v17 = vpop.f32.mrb[84].mxu1  ;;  %v3327_v50 = vpop.f32.mrb[117].mxu0  ;;  %v4818_v60 = vadd.f32 %v3325_v57, %v2155_v18 }
 0x2f1   : > { %v3215_v61 = vpop.f32.mrb[85].mxu1  ;;  %v3328_v24 = vadd.f32 %v3327_v50, %v3326_v47  ;;  %v3329_v26 = vpop.f32.mrb[118].mxu0 }
 0x2f2   : > { %v3216_v11 = vadd.f32 %v3215_v61, %v3214_v17  ;;  %v3217_v35 = vpop.f32.mrb[86].mxu1  ;;  %v3330_v7 = vpop.f32.mrb[119].mxu0 }
 0x2f3   : > { %v3218_v28 = vpop.f32.mrb[87].mxu1  ;;  %v3331_v9 = vadd.f32 %v3330_v7, %v3329_v26 }
 0x2f4   : > { %v2160_v56 = vadd.f32 %v3216_v11, %v4711_v43  ;;  %v3219_v12 = vadd.f32 %v3218_v28, %v3217_v35 }
 0x2f6   : > { %v2163_v6 = vadd.f32 %v3219_v12, %v4715_v27  ;;  %v4822_v48 = vadd.f32 %v3328_v24, %v2160_v56 }
 0x2f7   : > { %v3332_v38 = vpop.f32.mrb[120].mxu0 }
 0x2f8   : > { %v3220_v3 = vpop.f32.mrb[88].mxu1  ;;  %v3333_v32 = vpop.f32.mrb[121].mxu0  ;;  %v4824_v36 = vadd.f32 %v3331_v9, %v2163_v6 }
 0x2f9   : > { %v3221_v16 = vpop.f32.mrb[89].mxu1  ;;  %v3334_v46 = vadd.f32 %v3333_v32, %v3332_v38  ;;  %v3335_v10 = vpop.f32.mrb[122].mxu0 }
 0x2fa   : > { %v3222_v15 = vadd.f32 %v3221_v16, %v3220_v3  ;;  %v3223_v39 = vpop.f32.mrb[90].mxu1  ;;  %v3336_v40 = vpop.f32.mrb[123].mxu0 }
 0x2fb   : > { %v3224_v14 = vpop.f32.mrb[91].mxu1  ;;  %v3337_v45 = vadd.f32 %v3336_v40, %v3335_v10 }
 0x2fc   : > { %v2168_v43 = vadd.f32 %v3222_v15, %v4719_v4  ;;  %v3225_v2 = vadd.f32 %v3224_v14, %v3223_v39 }
 0x2fe   : > { %v2171_v27 = vadd.f32 %v3225_v2, %v4723_v22  ;;  %v4828_v57 = vadd.f32 %v3334_v46, %v2168_v43 }
 0x2ff   : > { %v3338_v62 = vpop.f32.mrb[124].mxu0 }
 0x300   : > { %v3226_v5 = vpop.f32.mrb[92].mxu1  ;;  %v3339_v18 = vpop.f32.mrb[125].mxu0  ;;  %v4830_v47 = vadd.f32 %v3337_v45, %v2171_v27 }
 0x301   : > { %v3227_v17 = vpop.f32.mrb[93].mxu1  ;;  %v3340_v50 = vadd.f32 %v3339_v18, %v3338_v62  ;;  %v3341_v61 = vpop.f32.mrb[126].mxu0 }
 0x302   : > { %v3228_v24 = vadd.f32 %v3227_v17, %v3226_v5  ;;  %v3229_v26 = vpop.f32.mrb[94].mxu1  ;;  %v3342_v11 = vpop.f32.mrb[127].mxu0 }
 0x303   : > { %v3230_v35 = vpop.f32.mrb[95].mxu1  ;;  %v3343_v7 = vadd.f32 %v3342_v11, %v3341_v61 }
 0x304   : > { %v2176_v4 = vadd.f32 %v3228_v24, %v4727_v54  ;;  %v3231_v28 = vadd.f32 %v3230_v35, %v3229_v26 }
 0x306   : > { %v2179_v22 = vadd.f32 %v3231_v28, %v4731_v0  ;;  %v4834_v9 = vadd.f32 %v3340_v50, %v2176_v4 }
 0x307   : > { %v3344_v56 = vpop.f32.mrb[128].mxu0 }
 0x308   : > { %v3232_v12 = vpop.f32.mrb[96].mxu1  ;;  %v3345_v6 = vpop.f32.mrb[129].mxu0  ;;  %v4836_v38 = vadd.f32 %v3343_v7, %v2179_v22 }
 0x309   : > { %v3233_v3 = vpop.f32.mrb[97].mxu1  ;;  %v3346_v32 = vadd.f32 %v3345_v6, %v3344_v56  ;;  %v3347_v16 = vpop.f32.mrb[130].mxu0 }
 0x30a   : > { %v3234_v46 = vadd.f32 %v3233_v3, %v3232_v12  ;;  %v3235_v10 = vpop.f32.mrb[98].mxu1  ;;  %v3348_v15 = vpop.f32.mrb[131].mxu0 }
 0x30b   : > { %v3236_v39 = vpop.f32.mrb[99].mxu1  ;;  %v3349_v40 = vadd.f32 %v3348_v15, %v3347_v16 }
 0x30c   : > { %v2184_v54 = vadd.f32 %v3234_v46, %v4735_v52  ;;  %v3237_v14 = vadd.f32 %v3236_v39, %v3235_v10 }
 0x30e   : > { %v2187_v0 = vadd.f32 %v3237_v14, %v4739_v25  ;;  %v4840_v45 = vadd.f32 %v3346_v32, %v2184_v54 }
 0x30f   : > { %v3350_v43 = vpop.f32.mrb[132].mxu0 }
 0x310   : > { %v3238_v2 = vpop.f32.mrb[100].mxu1  ;;  %v3351_v27 = vpop.f32.mrb[133].mxu0  ;;  %v4842_v62 = vadd.f32 %v3349_v40, %v2187_v0 }
 0x311   : > { %v3239_v5 = vpop.f32.mrb[101].mxu1  ;;  %v3352_v18 = vadd.f32 %v3351_v27, %v3350_v43  ;;  %v3353_v17 = vpop.f32.mrb[134].mxu0 }
 0x312   : > { %v3240_v50 = vadd.f32 %v3239_v5, %v3238_v2  ;;  %v3241_v61 = vpop.f32.mrb[102].mxu1  ;;  %v3354_v24 = vpop.f32.mrb[135].mxu0 }
 0x313   : > { %v3242_v26 = vpop.f32.mrb[103].mxu1  ;;  %v3355_v11 = vadd.f32 %v3354_v24, %v3353_v17 }
 0x314   : > { %v2192_v52 = vadd.f32 %v3240_v50, %v4743_v20  ;;  %v3243_v35 = vadd.f32 %v3242_v26, %v3241_v61 }
 0x316   : > { %v2195_v25 = vadd.f32 %v3243_v35, %v4747_v55  ;;  %v4846_v7 = vadd.f32 %v3352_v18, %v2192_v52 }
 0x317   : > { %v3356_v4 = vpop.f32.mrb[136].mxu0 }
 0x318   : > { %v3244_v28 = vpop.f32.mrb[104].mxu1  ;;  %v3357_v22 = vpop.f32.mrb[137].mxu0  ;;  %v4848_v56 = vadd.f32 %v3355_v11, %v2195_v25 }
 0x319   : > { %v3245_v12 = vpop.f32.mrb[105].mxu1  ;;  %v3358_v6 = vadd.f32 %v3357_v22, %v3356_v4  ;;  %v3359_v3 = vpop.f32.mrb[138].mxu0 }
 0x31a   : > { %v3246_v32 = vadd.f32 %v3245_v12, %v3244_v28  ;;  %v3247_v16 = vpop.f32.mrb[106].mxu1  ;;  %v3360_v46 = vpop.f32.mrb[139].mxu0 }
 0x31b   : > { %v3248_v10 = vpop.f32.mrb[107].mxu1  ;;  %v3361_v15 = vadd.f32 %v3360_v46, %v3359_v3 }
 0x31c   : > { %v2200_v20 = vadd.f32 %v3246_v32, %v4751_v49  ;;  %v3249_v39 = vadd.f32 %v3248_v10, %v3247_v16 }
 0x31e   : > { %v2203_v55 = vadd.f32 %v3249_v39, %v4755_v21  ;;  %v4852_v40 = vadd.f32 %v3358_v6, %v2200_v20 }
 0x31f   : > { %v3362_v54 = vpop.f32.mrb[140].mxu0 }
 0x320   : > { %v3250_v14 = vpop.f32.mrb[108].mxu1  ;;  %v3363_v0 = vpop.f32.mrb[141].mxu0  ;;  %v4854_v43 = vadd.f32 %v3361_v15, %v2203_v55 }
 0x321   : > { %v3251_v2 = vpop.f32.mrb[109].mxu1  ;;  %v3364_v27 = vadd.f32 %v3363_v0, %v3362_v54  ;;  %v3365_v5 = vpop.f32.mrb[142].mxu0 }
 0x322   : > { %v3252_v18 = vadd.f32 %v3251_v2, %v3250_v14  ;;  %v3253_v17 = vpop.f32.mrb[110].mxu1  ;;  %v3366_v50 = vpop.f32.mrb[143].mxu0 }
 0x323   : > { %v3254_v61 = vpop.f32.mrb[111].mxu1  ;;  %v3367_v24 = vadd.f32 %v3366_v50, %v3365_v5 }
 0x324   : > { %v2208_v49 = vadd.f32 %v3252_v18, %v4759_v8  ;;  %v3255_v26 = vadd.f32 %v3254_v61, %v3253_v17 }
 0x326   : > { %v2211_v21 = vadd.f32 %v3255_v26, %v4763_v31  ;;  %v4858_v11 = vadd.f32 %v3364_v27, %v2208_v49 }
 0x327   : > { %v3368_v52 = vpop.f32.mrb[144].mxu0 }
 0x328   : > { %v3256_v35 = vpop.f32.mrb[112].mxu1  ;;  %v3369_v25 = vpop.f32.mrb[145].mxu0  ;;  %v4860_v4 = vadd.f32 %v3367_v24, %v2211_v21 }
 0x329   : > { %v3257_v28 = vpop.f32.mrb[113].mxu1  ;;  %v3370_v22 = vadd.f32 %v3369_v25, %v3368_v52  ;;  %v3371_v12 = vpop.f32.mrb[146].mxu0 }
 0x32a   : > { %v3258_v6 = vadd.f32 %v3257_v28, %v3256_v35  ;;  %v3259_v3 = vpop.f32.mrb[114].mxu1  ;;  %v3372_v32 = vpop.f32.mrb[147].mxu0 }
 0x32b   : > { %v3260_v16 = vpop.f32.mrb[115].mxu1  ;;  %v3373_v46 = vadd.f32 %v3372_v32, %v3371_v12 }
 0x32c   : > { %v2216_v8 = vadd.f32 %v3258_v6, %v4767_v51  ;;  %v3261_v10 = vadd.f32 %v3260_v16, %v3259_v3 }
 0x32e   : > { %v2219_v31 = vadd.f32 %v3261_v10, %v4770_v58  ;;  %v4864_v15 = vadd.f32 %v3370_v22, %v2216_v8 }
 0x32f   : > { %v3374_v20 = vpop.f32.mrb[148].mxu0 }
 0x330   : > { %v3262_v39 = vpop.f32.mrb[116].mxu1  ;;  %v3375_v55 = vpop.f32.mrb[149].mxu0  ;;  %v4866_v54 = vadd.f32 %v3373_v46, %v2219_v31 }
 0x331   : > { %v3263_v14 = vpop.f32.mrb[117].mxu1  ;;  %v3376_v0 = vadd.f32 %v3375_v55, %v3374_v20  ;;  %v3377_v2 = vpop.f32.mrb[150].mxu0 }
 0x332   : > { %v3264_v27 = vadd.f32 %v3263_v14, %v3262_v39  ;;  %v3265_v5 = vpop.f32.mrb[118].mxu1  ;;  %v3378_v18 = vpop.f32.mrb[151].mxu0 }
 0x333   : > { %v3266_v17 = vpop.f32.mrb[119].mxu1  ;;  %v3379_v50 = vadd.f32 %v3378_v18, %v3377_v2 }
 0x334   : > { %v2224_v51 = vadd.f32 %v3264_v27, %v4773_v59  ;;  %v3267_v61 = vadd.f32 %v3266_v17, %v3265_v5 }
 0x336   : > { %v2227_v58 = vadd.f32 %v3267_v61, %v4776_v42  ;;  %v4870_v24 = vadd.f32 %v3376_v0, %v2224_v51 }
 0x337   : > { %v3380_v49 = vpop.f32.mrb[152].mxu0 }
 0x338   : > { %v3268_v26 = vpop.f32.mrb[120].mxu1  ;;  %v3381_v21 = vpop.f32.mrb[153].mxu0  ;;  %v4872_v52 = vadd.f32 %v3379_v50, %v2227_v58 }
 0x339   : > { %v3269_v35 = vpop.f32.mrb[121].mxu1  ;;  %v3382_v25 = vadd.f32 %v3381_v21, %v3380_v49  ;;  %v3383_v28 = vpop.f32.mrb[154].mxu0 }
 0x33a   : > { %v3270_v22 = vadd.f32 %v3269_v35, %v3268_v26  ;;  %v3271_v12 = vpop.f32.mrb[122].mxu1  ;;  %v3384_v6 = vpop.f32.mrb[155].mxu0 }
 0x33b   : > { %v3272_v3 = vpop.f32.mrb[123].mxu1  ;;  %v3385_v32 = vadd.f32 %v3384_v6, %v3383_v28 }
 0x33c   : > { %v2232_v59 = vadd.f32 %v3270_v22, %v4779_v30  ;;  %v3273_v16 = vadd.f32 %v3272_v3, %v3271_v12 }
 0x33e   : > { %v2235_v42 = vadd.f32 %v3273_v16, %v4782_v33  ;;  %v4876_v46 = vadd.f32 %v3382_v25, %v2232_v59 }
 0x33f   : > { %v3386_v8 = vpop.f32.mrb[156].mxu0 }
 0x340   : > { %v3274_v10 = vpop.f32.mrb[124].mxu1  ;;  %v3387_v31 = vpop.f32.mrb[157].mxu0  ;;  %v4878_v20 = vadd.f32 %v3385_v32, %v2235_v42 }
 0x341   : > { %v3275_v39 = vpop.f32.mrb[125].mxu1  ;;  %v3388_v55 = vadd.f32 %v3387_v31, %v3386_v8  ;;  %v3389_v14 = vpop.f32.mrb[158].mxu0 }
 0x342   : > { %v3276_v0 = vadd.f32 %v3275_v39, %v3274_v10  ;;  %v3277_v2 = vpop.f32.mrb[126].mxu1  ;;  %v3390_v27 = vpop.f32.mrb[159].mxu0 }
 0x343   : > { %v3278_v5 = vpop.f32.mrb[127].mxu1  ;;  %v3391_v18 = vadd.f32 %v3390_v27, %v3389_v14 }
 0x344   : > { %v2240_v30 = vadd.f32 %v3276_v0, %v4785_v37  ;;  %v3279_v17 = vadd.f32 %v3278_v5, %v3277_v2 }
 0x346   : > { %v2243_v33 = vadd.f32 %v3279_v17, %v4788_v53  ;;  %v4882_v50 = vadd.f32 %v3388_v55, %v2240_v30 }
 0x348   : > { %v3514_v51 = vpop.f32.mrb[128].mxu1  ;;  %v4884_v61 = vadd.f32 %v3391_v18, %v2243_v33 }
 0x349   : > { %v2450_v58 = vadd.f32 %v3514_v51, %v4798_v19  ;;  %v2441_v49 = vpop.f32.mrb[129].mxu1 }
 0x34a   : > { %v2442_v26 = vadd.f32 %v2441_v49, %v4792_v44  ;;  %v3515_v21 = vpop.f32.mrb[130].mxu1 }
 0x34b   : > { %vm2570_vm2 = vcmp.gt.f32.partialorder %v2450_v58, 0.0  ;;  %v2602_v35 = vmul.f32 0.01, %v2450_v58  ;;  %v2453_v25 = vadd.f32 %v3515_v21, %v4800_v13  ;;  %v2444_v37 = vpop.f32.mrb[131].mxu1 }
 0x34c   : > { %vm2568_vm3 = vcmp.gt.f32.partialorder %v2442_v26, 0.0  ;;  %v2600_v28 = vmul.f32 0.01, %v2442_v26  ;;  %v2445_v53 = vadd.f32 %v2444_v37, %v4794_v34 }
 0x34d   : > { %v2634_v22 = vsel %vm2570_vm2, %v2450_v58, %v2602_v35  ;;  %vm2571_vm8 = vcmp.gt.f32.partialorder %v2453_v25, 0.0  ;;  %v2603_v12 = vmul.f32 0.01, %v2453_v25 }
 0x34e   : > { %2666 = vst [vmem:[%s4892_s28 + $0x10] sm:$0xff] %v2634_v22  ;;  %v2632_v44 = vsel %vm2568_vm3, %v2442_v26, %v2600_v28  ;;  %vm2569_vm11 = vcmp.gt.f32.partialorder %v2445_v53, 0.0  ;;  %v2601_v19 = vmul.f32 0.01, %v2445_v53 }
 0x34f   : > { %2664 = vst [vmem:[%s4892_s28] sm:$0xff] %v2632_v44  ;;  %v2635_v13 = vsel %vm2571_vm8, %v2453_v25, %v2603_v12 }
 0x350   : > { %2667 = vst [vmem:[%s4892_s28 + $0x18] sm:$0xff] %v2635_v13  ;;  %v2633_v6 = vsel %vm2569_vm11, %v2445_v53, %v2601_v19  ;;  %v3518_v3 = vpop.f32.mrb[132].mxu1 }
 0x351   : > { %2665 = vst [vmem:[%s4892_s28 + $0x8] sm:$0xff] %v2633_v6  ;;  %v2466_v34 = vadd.f32 %v3518_v3, %v4810_v63  ;;  %v2457_v32 = vpop.f32.mrb[133].mxu1 }
 0x352   : > { %v2458_v59 = vadd.f32 %v2457_v32, %v4804_v29  ;;  %v3519_v16 = vpop.f32.mrb[134].mxu1 }
 0x353   : > { %vm2574_vm12 = vcmp.gt.f32.partialorder %v2466_v34, 0.0  ;;  %v2606_v42 = vmul.f32 0.01, %v2466_v34  ;;  %v2469_v8 = vadd.f32 %v3519_v16, %v4812_v1  ;;  %v2460_v10 = vpop.f32.mrb[135].mxu1 }
 0x354   : > { %vm2572_vm13 = vcmp.gt.f32.partialorder %v2458_v59, 0.0  ;;  %v2604_v31 = vmul.f32 0.01, %v2458_v59  ;;  %v2461_v39 = vadd.f32 %v2460_v10, %v4806_v23 }
 0x355   : > { %v2638_v55 = vsel %vm2574_vm12, %v2466_v34, %v2606_v42  ;;  %vm2575_vm14 = vcmp.gt.f32.partialorder %v2469_v8, 0.0  ;;  %v2607_v14 = vmul.f32 0.01, %v2469_v8 }
 0x356   : > { %2670 = vst [vmem:[%s4892_s28 + $0x30] sm:$0xff] %v2638_v55  ;;  %v2636_v63 = vsel %vm2572_vm13, %v2458_v59, %v2604_v31  ;;  %vm2573_vm15 = vcmp.gt.f32.partialorder %v2461_v39, 0.0  ;;  %v2605_v29 = vmul.f32 0.01, %v2461_v39 }
 0x357   : > { %2668 = vst [vmem:[%s4892_s28 + $0x20] sm:$0xff] %v2636_v63  ;;  %v2639_v0 = vsel %vm2575_vm14, %v2469_v8, %v2607_v14 }
 0x358   : > { %2671 = vst [vmem:[%s4892_s28 + $0x38] sm:$0xff] %v2639_v0  ;;  %v2637_v2 = vsel %vm2573_vm15, %v2461_v39, %v2605_v29  ;;  %v3522_v27 = vpop.f32.mrb[136].mxu1 }
 0x359   : > { %2669 = vst [vmem:[%s4892_s28 + $0x28] sm:$0xff] %v2637_v2  ;;  %v2482_v1 = vadd.f32 %v3522_v27, %v4822_v48  ;;  %v2473_v5 = vpop.f32.mrb[137].mxu1 }
 0x35a   : > { %v2474_v18 = vadd.f32 %v2473_v5, %v4816_v41  ;;  %v3523_v23 = vpop.f32.mrb[138].mxu1 }
 0x35b   : > { %vm2578_vm0 = vcmp.gt.f32.partialorder %v2482_v1, 0.0  ;;  %v2610_v30 = vmul.f32 0.01, %v2482_v1  ;;  %v2485_v17 = vadd.f32 %v3523_v23, %v4824_v36  ;;  %v2476_v33 = vpop.f32.mrb[139].mxu1 }
 0x35c   : > { %vm2576_vm1 = vcmp.gt.f32.partialorder %v2474_v18, 0.0  ;;  %v2608_v51 = vmul.f32 0.01, %v2474_v18  ;;  %v2477_v58 = vadd.f32 %v2476_v33, %v4818_v60 }
 0x35d   : > { %v2642_v49 = vsel %vm2578_vm0, %v2482_v1, %v2610_v30  ;;  %vm2579_vm4 = vcmp.gt.f32.partialorder %v2485_v17, 0.0  ;;  %v2611_v26 = vmul.f32 0.01, %v2485_v17 }
 0x35e   : > { %2674 = vst [vmem:[%s4892_s28 + $0x50] sm:$0xff] %v2642_v49  ;;  %v2640_v48 = vsel %vm2576_vm1, %v2474_v18, %v2608_v51  ;;  %vm2577_vm5 = vcmp.gt.f32.partialorder %v2477_v58, 0.0  ;;  %v2609_v41 = vmul.f32 0.01, %v2477_v58 }
 0x35f   : > { %2672 = vst [vmem:[%s4892_s28 + $0x40] sm:$0xff] %v2640_v48  ;;  %v2643_v21 = vsel %vm2579_vm4, %v2485_v17, %v2611_v26 }
 0x360   : > { %2675 = vst [vmem:[%s4892_s28 + $0x58] sm:$0xff] %v2643_v21  ;;  %v2641_v35 = vsel %vm2577_vm5, %v2477_v58, %v2609_v41  ;;  %v3526_v25 = vpop.f32.mrb[140].mxu1 }
 0x361   : > { %2673 = vst [vmem:[%s4892_s28 + $0x48] sm:$0xff] %v2641_v35  ;;  %v2498_v36 = vadd.f32 %v3526_v25, %v4834_v9  ;;  %v2489_v37 = vpop.f32.mrb[141].mxu1 }
 0x362   : > { %v2490_v28 = vadd.f32 %v2489_v37, %v4828_v57  ;;  %v3527_v60 = vpop.f32.mrb[142].mxu1 }
 0x363   : > { %vm2582_vm6 = vcmp.gt.f32.partialorder %v2498_v36, 0.0  ;;  %v2614_v53 = vmul.f32 0.01, %v2498_v36  ;;  %v2501_v22 = vadd.f32 %v3527_v60, %v4836_v38  ;;  %v2492_v12 = vpop.f32.mrb[143].mxu1 }
 0x364   : > { %vm2580_vm7 = vcmp.gt.f32.partialorder %v2490_v28, 0.0  ;;  %v2612_v44 = vmul.f32 0.01, %v2490_v28  ;;  %v2493_v19 = vadd.f32 %v2492_v12, %v4830_v47 }
 0x365   : > { %v2646_v13 = vsel %vm2582_vm6, %v2498_v36, %v2614_v53  ;;  %vm2583_vm9 = vcmp.gt.f32.partialorder %v2501_v22, 0.0  ;;  %v2615_v6 = vmul.f32 0.01, %v2501_v22 }
 0x366   : > { %2678 = vst [vmem:[%s4892_s28 + $0x70] sm:$0xff] %v2646_v13  ;;  %v2644_v9 = vsel %vm2580_vm7, %v2490_v28, %v2612_v44  ;;  %vm2581_vm10 = vcmp.gt.f32.partialorder %v2493_v19, 0.0  ;;  %v2613_v57 = vmul.f32 0.01, %v2493_v19 }
 0x367   : > { %2676 = vst [vmem:[%s4892_s28 + $0x60] sm:$0xff] %v2644_v9  ;;  %v2647_v3 = vsel %vm2583_vm9, %v2501_v22, %v2615_v6 }
 0x368   : > { %2679 = vst [vmem:[%s4892_s28 + $0x78] sm:$0xff] %v2647_v3  ;;  %v2645_v34 = vsel %vm2581_vm10, %v2493_v19, %v2613_v57  ;;  %v3530_v32 = vpop.f32.mrb[144].mxu1 }
 0x369   : > { %2677 = vst [vmem:[%s4892_s28 + $0x68] sm:$0xff] %v2645_v34  ;;  %v2514_v38 = vadd.f32 %v3530_v32, %v4846_v7  ;;  %v2505_v59 = vpop.f32.mrb[145].mxu1 }
 0x36a   : > { %v2506_v16 = vadd.f32 %v2505_v59, %v4840_v45  ;;  %v3531_v47 = vpop.f32.mrb[146].mxu1 }
 0x36b   : > { %vm2586_vm2 = vcmp.gt.f32.partialorder %v2514_v38, 0.0  ;;  %v2618_v42 = vmul.f32 0.01, %v2514_v38  ;;  %v2517_v8 = vadd.f32 %v3531_v47, %v4848_v56  ;;  %v2508_v10 = vpop.f32.mrb[147].mxu1 }
 0x36c   : > { %vm2584_vm3 = vcmp.gt.f32.partialorder %v2506_v16, 0.0  ;;  %v2616_v31 = vmul.f32 0.01, %v2506_v16  ;;  %v2509_v39 = vadd.f32 %v2508_v10, %v4842_v62 }
 0x36d   : > { %v2650_v55 = vsel %vm2586_vm2, %v2514_v38, %v2618_v42  ;;  %vm2587_vm8 = vcmp.gt.f32.partialorder %v2517_v8, 0.0  ;;  %v2619_v14 = vmul.f32 0.01, %v2517_v8 }
 0x36e   : > { %2682 = vst [vmem:[%s4892_s28 + $0x90] sm:$0xff] %v2650_v55  ;;  %v2648_v7 = vsel %vm2584_vm3, %v2506_v16, %v2616_v31  ;;  %vm2585_vm11 = vcmp.gt.f32.partialorder %v2509_v39, 0.0  ;;  %v2617_v45 = vmul.f32 0.01, %v2509_v39 }
 0x36f   : > { %2680 = vst [vmem:[%s4892_s28 + $0x80] sm:$0xff] %v2648_v7  ;;  %v2651_v63 = vsel %vm2587_vm8, %v2517_v8, %v2619_v14 }
 0x370   : > { %2683 = vst [vmem:[%s4892_s28 + $0x98] sm:$0xff] %v2651_v63  ;;  %v2649_v29 = vsel %vm2585_vm11, %v2509_v39, %v2617_v45  ;;  %v3534_v0 = vpop.f32.mrb[148].mxu1 }
 0x371   : > { %2681 = vst [vmem:[%s4892_s28 + $0x88] sm:$0xff] %v2649_v29  ;;  %v2530_v56 = vadd.f32 %v3534_v0, %v4858_v11  ;;  %v2521_v2 = vpop.f32.mrb[149].mxu1 }
 0x372   : > { %v2522_v27 = vadd.f32 %v2521_v2, %v4852_v40  ;;  %v3535_v62 = vpop.f32.mrb[150].mxu1 }
 0x373   : > { %vm2590_vm12 = vcmp.gt.f32.partialorder %v2530_v56, 0.0  ;;  %v2622_v1 = vmul.f32 0.01, %v2530_v56  ;;  %v2533_v5 = vadd.f32 %v3535_v62, %v4860_v4  ;;  %v2524_v18 = vpop.f32.mrb[151].mxu1 }
 0x374   : > { %vm2588_vm13 = vcmp.gt.f32.partialorder %v2522_v27, 0.0  ;;  %v2620_v23 = vmul.f32 0.01, %v2522_v27  ;;  %v2525_v30 = vadd.f32 %v2524_v18, %v4854_v43 }
 0x375   : > { %v2654_v17 = vsel %vm2590_vm12, %v2530_v56, %v2622_v1  ;;  %vm2591_vm14 = vcmp.gt.f32.partialorder %v2533_v5, 0.0  ;;  %v2623_v33 = vmul.f32 0.01, %v2533_v5 }
 0x376   : > { %2686 = vst [vmem:[%s4892_s28 + $0xb0] sm:$0xff] %v2654_v17  ;;  %v2652_v11 = vsel %vm2588_vm13, %v2522_v27, %v2620_v23  ;;  %vm2589_vm15 = vcmp.gt.f32.partialorder %v2525_v30, 0.0  ;;  %v2621_v40 = vmul.f32 0.01, %v2525_v30 }
 0x377   : > { %2684 = vst [vmem:[%s4892_s28 + $0xa0] sm:$0xff] %v2652_v11  ;;  %v2655_v51 = vsel %vm2591_vm14, %v2533_v5, %v2623_v33 }
 0x378   : > { %2687 = vst [vmem:[%s4892_s28 + $0xb8] sm:$0xff] %v2655_v51  ;;  %v2653_v58 = vsel %vm2589_vm15, %v2525_v30, %v2621_v40  ;;  %v3538_v49 = vpop.f32.mrb[152].mxu1 }
 0x379   : > { %2685 = vst [vmem:[%s4892_s28 + $0xa8] sm:$0xff] %v2653_v58  ;;  %v2546_v4 = vadd.f32 %v3538_v49, %v4870_v24  ;;  %v2537_v26 = vpop.f32.mrb[153].mxu1 }
 0x37a   : > { %v2538_v48 = vadd.f32 %v2537_v26, %v4864_v15  ;;  %v3539_v43 = vpop.f32.mrb[154].mxu1 }
 0x37b   : > { %vm2594_vm0 = vcmp.gt.f32.partialorder %v2546_v4, 0.0  ;;  %v2626_v41 = vmul.f32 0.01, %v2546_v4  ;;  %v2549_v21 = vadd.f32 %v3539_v43, %v4872_v52  ;;  %v2540_v35 = vpop.f32.mrb[155].mxu1 }
 0x37c   : > { %vm2592_vm1 = vcmp.gt.f32.partialorder %v2538_v48, 0.0  ;;  %v2624_v25 = vmul.f32 0.01, %v2538_v48  ;;  %v2541_v36 = vadd.f32 %v2540_v35, %v4866_v54 }
 0x37d   : > { %v2658_v37 = vsel %vm2594_vm0, %v2546_v4, %v2626_v41  ;;  %vm2595_vm4 = vcmp.gt.f32.partialorder %v2549_v21, 0.0  ;;  %v2627_v28 = vmul.f32 0.01, %v2549_v21 }
 0x37e   : > { %2690 = vst [vmem:[%s4892_s28 + $0xd0] sm:$0xff] %v2658_v37  ;;  %v2656_v24 = vsel %vm2592_vm1, %v2538_v48, %v2624_v25  ;;  %vm2593_vm5 = vcmp.gt.f32.partialorder %v2541_v36, 0.0  ;;  %v2625_v15 = vmul.f32 0.01, %v2541_v36 }
 0x37f   : > { %2688 = vst [vmem:[%s4892_s28 + $0xc0] sm:$0xff] %v2656_v24  ;;  %v2659_v60 = vsel %vm2595_vm4, %v2549_v21, %v2627_v28 }
 0x380   : > { %2691 = vst [vmem:[%s4892_s28 + $0xd8] sm:$0xff] %v2659_v60  ;;  %v2657_v53 = vsel %vm2593_vm5, %v2541_v36, %v2625_v15  ;;  %v3542_v52 = vpop.f32.mrb[156].mxu1 }
 0x381   : > { %2689 = vst [vmem:[%s4892_s28 + $0xc8] sm:$0xff] %v2657_v53  ;;  %v2562_v22 = vadd.f32 %v3542_v52, %v4882_v50  ;;  %v2553_v12 = vpop.f32.mrb[157].mxu1 }
 0x382   : > { %v2554_v54 = vadd.f32 %v2553_v12, %v4876_v46  ;;  %v3543_v44 = vpop.f32.mrb[158].mxu1 }
 0x383   : > { %vm2598_vm6 = vcmp.gt.f32.partialorder %v2562_v22, 0.0  ;;  %v2630_v19 = vmul.f32 0.01, %v2562_v22  ;;  %v2565_v13 = vadd.f32 %v3543_v44, %v4884_v61  ;;  %v2556_v6 = vpop.f32.mrb[159].mxu1 }
 0x384   : > { %vm2596_vm7 = vcmp.gt.f32.partialorder %v2554_v54, 0.0  ;;  %v2628_v9 = vmul.f32 0.01, %v2554_v54  ;;  %v2557_v50 = vadd.f32 %v2556_v6, %v4878_v20 }
 0x385   : > { %v2662_v57 = vsel %vm2598_vm6, %v2562_v22, %v2630_v19  ;;  %vm2599_vm9 = vcmp.gt.f32.partialorder %v2565_v13, 0.0  ;;  %v2631_v46 = vmul.f32 0.01, %v2565_v13 }
 0x386   : > { %2694 = vst [vmem:[%s4892_s28 + $0xf0] sm:$0xff] %v2662_v57  ;;  %v2660_v3 = vsel %vm2596_vm7, %v2554_v54, %v2628_v9  ;;  %vm2597_vm10 = vcmp.gt.f32.partialorder %v2557_v50, 0.0  ;;  %v2629_v34 = vmul.f32 0.01, %v2557_v50 }
 0x387   : > { %2692 = vst [vmem:[%s4892_s28 + $0xe0] sm:$0xff] %v2660_v3  ;;  %v2663_v20 = vsel %vm2599_vm9, %v2565_v13, %v2631_v46 }
 0x388   : > { %2695 = vst [vmem:[%s4892_s28 + $0xf8] sm:$0xff] %v2663_v20  ;;  %v2661_v61 = vsel %vm2597_vm10, %v2557_v50, %v2629_v34 }
 0x389   : > { %2693 = vst [vmem:[%s4892_s28 + $0xe8] sm:$0xff] %v2661_v61 }
 0x38a   : > { %3821 = shalt.err (!%p3818_p1)
}
 0x38b   : > { %s3822_s14 = scalar_lea.hbm %s4956_s22, 4096  ;;  %s3826_s15 = scalar_lea.hbm %s5010_s5, 8192 }
 0x38c   : > { %p3823_p13 = scmp.ne.s32.totalorder %s4956_s22, %s3822_s14  ;;  %p3827_p4 = scmp.lt.u32.totalorder %s4956_s22, %s5010_s5 }
 0x38d   : > { %p3828_p7 = scmp.lt.u32.totalorder %s3826_s15, %s3822_s14  ;;  %p3830_p11 = scmp.lt.u32.totalorder %s3822_s14, %s4956_s22 }
 0x38e   : > { %p3824_p6 = pnand %p3823_p13, %p5029_p0 }
 0x38f   : > { %p3829_p8 = por %p3828_p7, %p3827_p4 }
 0x390   : > { %p3825_p10 = pneg %p3824_p6 }
 0x391   : > { %p3831_p2 = por %p3830_p11, %p3829_p8 }
 0x393   : > { %p3832_p3 = pnand %p3831_p2, %p3825_p10 }
 0x395   : > { %3835 = shalt.err (!%p3832_p3)
}
 0x396   : > { %s3889_s13 = smov 128   ;;  %s3890_s11 = smov 8  }
 0x397   : > { %3586 = dma.vmem_to_hbm [thread:$0]  (%p5029_p0), %s4958_s17, 4096, %s4956_s22, %s2697_s12, %s3889_s13, %s3889_s13, %s3890_s11  }
 0x398 PF: > { %s2725_s29 = sand.u32 1, %s3866_s18   ;;  %p5030_p5 = scmp.ne.s32.totalorder %s5016_s25, 0 }
 0x399   : > { %p5031_p9 = scmp.ge.s32.totalorder %s3878_s21, 2  ;;  %s2726_s30 = scalar_lea.sflag [#allocation4], %s2725_s29 }
 0x39b   : > { %p3600_p12 = pnand %p5031_p9, %p5030_p5 }
 0x39d   : > { %3861 = dma.done.wait (!%p3600_p12), %s2726_s30, 4096  }
 0x39e   : > { %3863 = vsyncadd (!%p3600_p12), %s2726_s30, 4294963200  ;;  %p19_p1 = scmp.ge.s32.totalorder %s4034_s23, 4   ;;  %s5032_s18 = smov %s3870_s19 }
 0x39f   : > { %s5033_s19 = smov %s3874_s20  ;;  %s5034_s20 = smov %s4043_s7 }
 0x3a0   : > { %s5035_s21 = smov %s4034_s23  ;;  %21 = sbr.rel (!%p19_p1) target bundleno = 6 (0x6), region = 93 }
 0x3a7   :  { %2731 = vsyncpa [#allocation3], 1 }
 0x3a8   :  { %2733 = vsyncpa [#allocation3 + $0x1], 1 }
 0x3a9   :  { %2734 = vsyncpa [#allocation6], 1 }
 0x3aa   :  { %2735 = vsyncpa [#allocation4], 1 }
 0x3ab   :  { %2737 = vsyncpa [#allocation4 + $0x1], 1 }

</bundles_post_ra>
